<compile_context>
chip_gen: v7x
topology: tpu7x:2x2x1
jax: 0.10.0
libtpu: 0.0.40
codegen_flags: <defaults>
</compile_context>

<pallas_src>
import math
import numpy as np

import jax
import jax.numpy as jnp
from jax.experimental import pallas as pl
from jax.experimental.pallas import tpu as pltpu


def _round_up(x, m):
    return ((x + m - 1) // m) * m


# ---------------------------------------------------------------------------
# Hermite basis / rotation machinery (deterministic numpy parameter setup, glue)
# ---------------------------------------------------------------------------
def hermite_coefficients(mu, nu):
    mu = int(round(mu))
    nu = int(round(nu))
    c = np.zeros(nu + 1, dtype=np.float64)
    for r in range(nu + 1):
        c[r] = (math.gamma(mu + nu + 1) * math.gamma(nu + 1) * ((-2.0) ** r)
                / (math.gamma(mu + r + 1) * math.gamma(nu - r + 1) * math.gamma(r + 1)))
    return c


def hermite_2d(N, npts, xvalmax=None):
    """2D Hermite function basis (N*(N+1)/2 functions on an npts x npts grid)."""
    xvalmax = xvalmax or 2.5 * np.sqrt(N)
    xvalmax *= 1 - 1.0 / npts
    xvals = np.linspace(-xvalmax, xvalmax, npts, endpoint=True)[..., None]

    gxv = np.exp(-(xvals ** 2) / 4.0)
    gaussian = np.dot(gxv, gxv.T)

    mu = np.array([])
    nu = np.array([])
    desc = []
    for rank in range(N):
        muadd = np.sort(np.abs(np.arange(-rank, rank + 0.1, 2)))
        mu = np.hstack([mu, muadd])
        nu = np.hstack([nu, (rank - muadd) / 2.0])
        if not (rank % 2):
            desc.append("z")
        desc += ["r", "i"] * int(np.floor((rank + 1) / 2))

    theta = np.arctan2(xvals, xvals.T)
    radsq = xvals ** 2 + xvals.T ** 2
    nbases = mu.size
    H = np.zeros([nbases, npts, npts], dtype=np.float64)
    for i, (mui, nui, desci) in enumerate(zip(mu, nu, desc)):
        c = hermite_coefficients(mui, nui)
        radvals = np.zeros_like(radsq)
        for k, ck in enumerate(c):
            radvals = radvals + ck * radsq ** k
        basis = gaussian * (radsq ** (mui / 2.0)) * radvals * np.exp(1j * mui * theta)
        basis = basis / np.sqrt(2 ** (mui + 2 * nui) * np.pi
                                * math.factorial(int(mui + nui)) * math.factorial(int(nui)))
        if desci == "z":
            H[i] = basis.real / np.sqrt(2.0)
        elif desci == "r":
            H[i] = basis.real
        else:
            H[i] = basis.imag
    H = H / np.sqrt(np.sum(H ** 2, axis=(1, 2), keepdims=True))
    return H, desc, mu


def rotation_matrix(desc, mu, angle):
    n = len(desc)
    R = np.zeros((n, n), dtype=np.float64)
    for i, (d, m) in enumerate(zip(desc, mu)):
        if d == "r":
            c, s = np.cos(m * angle), np.sin(m * angle)
            R[i, i] = c
            R[i, i + 1] = s
            R[i + 1, i] = -s
            R[i + 1, i + 1] = c
        elif d == "z":
            R[i, i] = 1.0
    return R


def build_core(key, num_rotations, upsampling, filter_size, num_filters):
    """Deterministic construction of the per-layer parameters (coeffs, basis, rotation mats)."""
    layers = []
    input_features = 1
    for li, (fs, nf) in enumerate(zip(filter_size, num_filters)):
        n_coeffs = fs * (fs + 1) // 2
        H, desc, mu = hermite_2d(fs, fs * upsampling, 2 * np.sqrt(fs))
        angles = [r * 2 * np.pi / num_rotations for r in range(num_rotations)]
        Rs = np.stack([rotation_matrix(desc, mu, a) for a in angles])
        key, sub = jax.random.split(key)
        fan_in = n_coeffs * input_features
        coeffs = jax.random.normal(sub, (n_coeffs, input_features, nf),
                                   dtype=jnp.float32) * (1.0 / np.sqrt(fan_in))
        layers.append(dict(
            coeffs=coeffs,
            H=jnp.asarray(H, jnp.float32),
            Rs=jnp.asarray(Rs, jnp.float32),
            num_rotations=num_rotations,
            upsampling=upsampling,
            first_layer=(li == 0),
            filter_size=fs,
            num_filters=nf,
        ))
        input_features = nf * num_rotations
    return layers


def hermite_filters(layer):
    """Weight synthesis (RotateHermite + downsample), vectorised plain-JAX glue.

    Returns HWIO filters of shape (fs, fs, Cin, nf * num_rotations)."""
    coeffs = layer["coeffs"]            # (n_coeffs, Cin, nf)
    H = layer["H"]                      # (n_coeffs, npts, npts)
    Rs = layer["Rs"]                    # (num_rot, n_coeffs, n_coeffs)
    num_rot = layer["num_rotations"]
    up = layer["upsampling"]
    first = layer["first_layer"]
    fs = layer["filter_size"]
    _, n_in, nf = coeffs.shape
    num_inputs = n_in if first else n_in // num_rot

    # All rotations at once: w[r,p,q,c,f] = sum_{a,b} H[a,p,q] * Rs[r,a,b] * coeffs[b,c,f]
    w = jnp.einsum("rab,bcf,apq->rpqcf", Rs, coeffs, H)      # (R, npts, npts, Cin, nf)

    # Cyclic permutation of the input rotation-channel groups (identity for the first layer):
    # new[c] = old[(c + r*num_inputs) % Cin]  ==  torch.cat([w[:,:,shift:], w[:,:,:shift]], 2)
    idx = (np.arange(n_in)[None, :] + np.arange(num_rot)[:, None] * num_inputs) % n_in
    idx = jnp.asarray(idx, jnp.int32)[:, None, None, :, None]            # (R,1,1,Cin,1)
    idx = jnp.broadcast_to(idx, (num_rot, w.shape[1], w.shape[2], n_in, nf))
    w = jnp.take_along_axis(w, idx, axis=3)

    # Concatenate over rotations on the output-channel axis (rotation-major, filter-minor).
    npts = fs * up
    w = jnp.transpose(w, (1, 2, 3, 0, 4)).reshape(npts, npts, n_in, num_rot * nf)

    # downsample_weights: sum of the up x up strided phases == reshape + sum
    w = w.reshape(fs, up, fs, up, n_in, num_rot * nf).sum(axis=(1, 3))
    return w.astype(jnp.float32)                              # (fs, fs, Cin, Cout)  HWIO


# ---------------------------------------------------------------------------
# Pallas conv2d (valid padding, stride 1, no bias) as ONE im2col GEMM per layer
# ---------------------------------------------------------------------------
def _matmul_kernel(a_ref, b_ref, o_ref):
    # a_ref: (TM, K_pad) bf16, b_ref: (K_pad, COUT_P) bf16, o_ref: (TM, COUT_P) f32
    o_ref[...] = jnp.dot(a_ref[...], b_ref[...],
                         preferred_element_type=jnp.float32).astype(o_ref.dtype)


def conv2d_valid_pallas(x_nhwc, w_hwio, *, tile_m=256):
    """Cross-correlation (as F.conv2d) with padding=0, stride=1.

    Restructured as a single GEMM: im2col patch matrix (N*OH*OW, KH*KW*Cin) x weights
    (KH*KW*Cin, Cout).  Inputs are cast to bf16 (MXU-native), accumulation is f32,
    Cout is padded to 128 so the output stores are lane-dense."""
    N, H, W, Cin = x_nhwc.shape
    KH, KW, Cin_w, Cout = w_hwio.shape
    assert Cin == Cin_w
    OH, OW = H - KH + 1, W - KW + 1
    K = KH * KW * Cin
    M = N * OH * OW

    # im2col in the wrapper (XLA glue; ordering = (kh, kw, cin), row-major over (n, oh, ow)).
    # TODO(synk): for production-sized images, fuse the im2col into the kernel with row-band
    #             DMA (halo via index_map) so HBM traffic stays O(image) instead of O(K*image).
    cols = []
    for kh in range(KH):
        for kw in range(KW):
            cols.append(jax.lax.slice(x_nhwc, (0, kh, kw, 0), (N, kh + OH, kw + OW, Cin)))
    patches = jnp.concatenate(cols, axis=-1).reshape(M, K).astype(jnp.bfloat16)
    w_mat = w_hwio.reshape(K, Cout).astype(jnp.bfloat16)

    # Pad: M -> multiple of tile_m, K -> multiple of 128 (aligned lanes/sublanes),
    # Cout -> multiple of 128 (lane-dense output).  Zero padding does not change results.
    M_pad = _round_up(M, tile_m)
    K_pad = _round_up(K, 128)
    COUT_P = _round_up(Cout, 128)
    patches = jnp.pad(patches, ((0, M_pad - M), (0, K_pad - K)))
    w_mat = jnp.pad(w_mat, ((0, K_pad - K), (0, COUT_P - Cout)))

    out = pl.pallas_call(
        _matmul_kernel,
        out_shape=jax.ShapeDtypeStruct((M_pad, COUT_P), jnp.float32),
        grid=(M_pad // tile_m,),
        in_specs=[
            pl.BlockSpec((tile_m, K_pad), lambda i: (i, 0)),
            pl.BlockSpec((K_pad, COUT_P), lambda i: (0, 0)),
        ],
        out_specs=pl.BlockSpec((tile_m, COUT_P), lambda i: (i, 0)),
        compiler_params=pltpu.CompilerParams(
            dimension_semantics=("parallel",)),
    )(patches, w_mat)

    return out[:M, :Cout].reshape(N, OH, OW, Cout)


def conv2d_valid_ref(x_nhwc, w_hwio):
    # Reference path with the same precision choice (bf16 inputs, f32 accumulation).
    return jax.lax.conv_general_dilated(
        x_nhwc.astype(jnp.bfloat16), w_hwio.astype(jnp.bfloat16),
        window_strides=(1, 1), padding="VALID",
        dimension_numbers=("NHWC", "HWIO", "NHWC"),
        preferred_element_type=jnp.float32)


# ---------------------------------------------------------------------------
# Core forward: sequential HermiteConv2D layers
# ---------------------------------------------------------------------------
def rotation_equivariant_core_forward(x_nchw, layers, conv_fn=conv2d_valid_pallas):
    # layout: input/output NCHW (PyTorch semantics); internal compute NHWC.
    x = jnp.transpose(x_nchw.astype(jnp.float32), (0, 2, 3, 1))
    for layer in layers:
        w = hermite_filters(layer)          # (fs, fs, Cin, Cout) HWIO
        x = conv_fn(x, w)                   # f32 activations between layers
    return jnp.transpose(x, (0, 3, 1, 2))   # back to NCHW


if __name__ == "__main__":
    # Small but structurally faithful configuration of RotationEquivariantCore.
    num_rotations, upsampling = 4, 2
    filter_size, num_filters = [7, 5, 3], [4, 8, 8]

    key = jax.random.PRNGKey(0)
    key, kx = jax.random.split(key)
    x = jax.random.normal(kx, (2, 1, 24, 24), dtype=jnp.float32)   # NCHW, 1 input channel

    layers = build_core(key, num_rotations, upsampling, filter_size, num_filters)

    fwd_pallas = jax.jit(lambda xx: rotation_equivariant_core_forward(
        xx, layers, conv2d_valid_pallas))
    fwd_ref = jax.jit(lambda xx: rotation_equivariant_core_forward(
        xx, layers, conv2d_valid_ref))

    out = jax.block_until_ready(fwd_pallas(x))
    ref = jax.block_until_ready(fwd_ref(x))

    expected_shape = (2, num_filters[-1] * num_rotations, 12, 12)   # 24->18->14->12 spatial
    assert out.shape == expected_shape, out.shape
    rel_err = float(jnp.max(jnp.abs(out - ref)) / (jnp.max(jnp.abs(ref)) + 1e-6))
    assert rel_err < 3e-2, f"mismatch vs reference conv: rel_err={rel_err}"

    print("KERNEL_OK")
</pallas_src>

<mosaic_0001>
module attributes {stable_mosaic.version = 11 : i64} {
  func.func @_matmul_kernel(%arg0: i32, %arg1: memref<256x128xbf16, #tpu.memory_space<vmem>>, %arg2: memref<128x128xbf16, #tpu.memory_space<vmem>>, %arg3: memref<256x128xf32, #tpu.memory_space<vmem>>) attributes {dimension_semantics = [#tpu.dimension_semantics<parallel>], iteration_bounds = array<i64: 3>, scalar_prefetch = 0 : i64, scratch_operands = 0 : i64, tpu.core_type = #tpu.core_type<tc>, window_params = [{transform_indices = @transform_0, window_bounds = array<i64: 256, 128>}, {pipeline_mode = #tpu.pipeline_mode<synchronous>, transform_indices = @transform_1, window_bounds = array<i64: 128, 128>}, {transform_indices = @transform_2, window_bounds = array<i64: 256, 128>}]} {
    %c0 = arith.constant 0 : index
    %c0_0 = arith.constant 0 : index
    %0 = vector.load %arg1[%c0, %c0_0] : memref<256x128xbf16, #tpu.memory_space<vmem>>, vector<256x128xbf16>
    %c0_1 = arith.constant 0 : index
    %c0_2 = arith.constant 0 : index
    %1 = vector.load %arg2[%c0_1, %c0_2] : memref<128x128xbf16, #tpu.memory_space<vmem>>, vector<128x128xbf16>
    %cst = arith.constant dense<0.000000e+00> : vector<256x128xf32>
    %2 = tpu.matmul %0, %1, %cst {dimension_numbers = #tpu.dot_dimension_numbers<[1], [0], [0], [1], [0, 0, 1, 1], [], []>} : vector<256x128xbf16>, vector<128x128xbf16>, vector<256x128xf32> -> vector<256x128xf32>
    %c0_3 = arith.constant 0 : index
    %c0_4 = arith.constant 0 : index
    %3 = vector.load %arg3[%c0_3, %c0_4] : memref<256x128xf32, #tpu.memory_space<vmem>>, vector<256x128xf32>
    tpu.vector_store %arg3[%c0_3, %c0_4], %2 {strides = array<i32>} : memref<256x128xf32, #tpu.memory_space<vmem>>, vector<256x128xf32>,
    return
  }
  func.func @transform_0(%arg0: i32) -> (i32, i32) {
    %c0_i32 = arith.constant 0 : i32
    %c0_i32_0 = arith.constant 0 : i32
    return %arg0, %c0_i32 : i32, i32
  }
  func.func @transform_1(%arg0: i32) -> (i32, i32) {
    %c0_i32 = arith.constant 0 : i32
    %c0_i32_0 = arith.constant 0 : i32
    %c0_i32_1 = arith.constant 0 : i32
    return %c0_i32, %c0_i32_0 : i32, i32
  }
  func.func @transform_2(%arg0: i32) -> (i32, i32) {
    %c0_i32 = arith.constant 0 : i32
    %c0_i32_0 = arith.constant 0 : i32
    return %arg0, %c0_i32 : i32, i32
  }
}

module attributes {stable_mosaic.version = 11 : i64} {
  func.func @_matmul_kernel(%arg0: i32, %arg1: memref<256x512xbf16, #tpu.memory_space<vmem>>, %arg2: memref<512x128xbf16, #tpu.memory_space<vmem>>, %arg3: memref<256x128xf32, #tpu.memory_space<vmem>>) attributes {dimension_semantics = [#tpu.dimension_semantics<parallel>], iteration_bounds = array<i64: 2>, scalar_prefetch = 0 : i64, scratch_operands = 0 : i64, tpu.core_type = #tpu.core_type<tc>, window_params = [{transform_indices = @transform_0, window_bounds = array<i64: 256, 512>}, {pipeline_mode = #tpu.pipeline_mode<synchronous>, transform_indices = @transform_1, window_bounds = array<i64: 512, 128>}, {transform_indices = @transform_2, window_bounds = array<i64: 256, 128>}]} {
    %c0 = arith.constant 0 : index
    %c0_0 = arith.constant 0 : index
    %0 = vector.load %arg1[%c0, %c0_0] : memref<256x512xbf16, #tpu.memory_space<vmem>>, vector<256x512xbf16>
    %c0_1 = arith.constant 0 : index
    %c0_2 = arith.constant 0 : index
    %1 = vector.load %arg2[%c0_1, %c0_2] : memref<512x128xbf16, #tpu.memory_space<vmem>>, vector<512x128xbf16>
    %cst = arith.constant dense<0.000000e+00> : vector<256x128xf32>
    %2 = tpu.matmul %0, %1, %cst {dimension_numbers = #tpu.dot_dimension_numbers<[1], [0], [0], [1], [0, 0, 1, 1], [], []>} : vector<256x512xbf16>, vector<512x128xbf16>, vector<256x128xf32> -> vector<256x128xf32>
    %c0_3 = arith.constant 0 : index
    %c0_4 = arith.constant 0 : index
    %3 = vector.load %arg3[%c0_3, %c0_4] : memref<256x128xf32, #tpu.memory_space<vmem>>, vector<256x128xf32>
    tpu.vector_store %arg3[%c0_3, %c0_4], %2 {strides = array<i32>} : memref<256x128xf32, #tpu.memory_space<vmem>>, vector<256x128xf32>,
    return
  }
  func.func @transform_0(%arg0: i32) -> (i32, i32) {
    %c0_i32 = arith.constant 0 : i32
    %c0_i32_0 = arith.constant 0 : i32
    return %arg0, %c0_i32 : i32, i32
  }
  func.func @transform_1(%arg0: i32) -> (i32, i32) {
    %c0_i32 = arith.constant 0 : i32
    %c0_i32_0 = arith.constant 0 : i32
    %c0_i32_1 = arith.constant 0 : i32
    return %c0_i32, %c0_i32_0 : i32, i32
  }
  func.func @transform_2(%arg0: i32) -> (i32, i32) {
    %c0_i32 = arith.constant 0 : i32
    %c0_i32_0 = arith.constant 0 : i32
    return %arg0, %c0_i32 : i32, i32
  }
}

module attributes {stable_mosaic.version = 11 : i64} {
  func.func @_matmul_kernel(%arg0: i32, %arg1: memref<256x384xbf16, #tpu.memory_space<vmem>>, %arg2: memref<384x128xbf16, #tpu.memory_space<vmem>>, %arg3: memref<256x128xf32, #tpu.memory_space<vmem>>) attributes {dimension_semantics = [#tpu.dimension_semantics<parallel>], iteration_bounds = array<i64: 2>, scalar_prefetch = 0 : i64, scratch_operands = 0 : i64, tpu.core_type = #tpu.core_type<tc>, window_params = [{transform_indices = @transform_0, window_bounds = array<i64: 256, 384>}, {pipeline_mode = #tpu.pipeline_mode<synchronous>, transform_indices = @transform_1, window_bounds = array<i64: 384, 128>}, {transform_indices = @transform_2, window_bounds = array<i64: 256, 128>}]} {
    %c0 = arith.constant 0 : index
    %c0_0 = arith.constant 0 : index
    %0 = vector.load %arg1[%c0, %c0_0] : memref<256x384xbf16, #tpu.memory_space<vmem>>, vector<256x384xbf16>
    %c0_1 = arith.constant 0 : index
    %c0_2 = arith.constant 0 : index
    %1 = vector.load %arg2[%c0_1, %c0_2] : memref<384x128xbf16, #tpu.memory_space<vmem>>, vector<384x128xbf16>
    %cst = arith.constant dense<0.000000e+00> : vector<256x128xf32>
    %2 = tpu.matmul %0, %1, %cst {dimension_numbers = #tpu.dot_dimension_numbers<[1], [0], [0], [1], [0, 0, 1, 1], [], []>} : vector<256x384xbf16>, vector<384x128xbf16>, vector<256x128xf32> -> vector<256x128xf32>
    %c0_3 = arith.constant 0 : index
    %c0_4 = arith.constant 0 : index
    %3 = vector.load %arg3[%c0_3, %c0_4] : memref<256x128xf32, #tpu.memory_space<vmem>>, vector<256x128xf32>
    tpu.vector_store %arg3[%c0_3, %c0_4], %2 {strides = array<i32>} : memref<256x128xf32, #tpu.memory_space<vmem>>, vector<256x128xf32>,
    return
  }
  func.func @transform_0(%arg0: i32) -> (i32, i32) {
    %c0_i32 = arith.constant 0 : i32
    %c0_i32_0 = arith.constant 0 : i32
    return %arg0, %c0_i32 : i32, i32
  }
  func.func @transform_1(%arg0: i32) -> (i32, i32) {
    %c0_i32 = arith.constant 0 : i32
    %c0_i32_0 = arith.constant 0 : i32
    %c0_i32_1 = arith.constant 0 : i32
    return %c0_i32, %c0_i32_0 : i32, i32
  }
  func.func @transform_2(%arg0: i32) -> (i32, i32) {
    %c0_i32 = arith.constant 0 : i32
    %c0_i32_0 = arith.constant 0 : i32
    return %arg0, %c0_i32 : i32, i32
  }
}

</mosaic_0001>

<bundles_post_ra>
// kernel: _lambda_.3
= control target key start
LH: loop header
LB: loop body
LE: loop exit
PB: predicated region body
PF: predicated region fallthrough
CT: control target
= control target key end

     0   :  { %7 = vsyncpa [#allocation3], 0  ;;  %s844_s9 = smov 0   ;;  %s959_s0 = inlined_call_operand.vmem [shape: bf16[768,128], index: 0, kind: input, shape index: {}]   ;;  %s960_s1 = inlined_call_operand.hbm [shape: bf16[128,128], index: 1, kind: input, shape index: {}]   ;;  %s961_s2 = inlined_call_operand.vmem [shape: f32[768,128], index: 2, kind: output, shape index: {}]  }
   0x1 LB: > { %s616_s10 = sadd.s32 4294967295, %s824_s9   ;;  %p618_p0 = scmp.ge.s32.totalorder %s824_s9, 1  ;;  %s824_s9 = sphi %s844_s9, %s13_s9  }
   0x2   : > { %p91_p1 = scmp.lt.s32.totalorder %s824_s9, 4  ;;  %s826_s11 = smov [#allocation2]  }
   0x3   : > { %s103_s12 = sshll.u32 %s826_s11, 4  ;;  %p858_p3 = scmp.eq.s32.totalorder %s616_s10, 0  ;;  %s104_s12 = int_to_ptr.vmem [resolvable:$true] %s103_s12 }
   0x4   : > { %p852_p2 = pnand %p618_p0, %p91_p1  ;;  %s786_s18 = scalar_lea.hbm %s960_s1, 1024 }
   0x5   : > { %s966_s14 = scalar_select %p858_p3, 1, 0 }
   0x6   : > { %s965_s13 = scalar_select %p852_p2, 1, 0 }
   0x7   : > { %p745_p4 = pneg %p852_p2  ;;  %p787_p6 = scmp.ne.s32.totalorder %s960_s1, %s786_s18 }
   0x8   : > { %p793_p10 = scmp.lt.u32.totalorder %s786_s18, %s960_s1 }
   0x9   : > { %p866_p5 = pnand %p858_p3, %p745_p4 }
   0xb   : > { %p788_p7 = pneg %p866_p5 }
   0xd   : > { %p789_p8 = pnand %p788_p7, %p787_p6 }
   0xf   : > { %p790_p9 = pneg %p789_p8 }
  0x11   : > { %p795_p11 = pnand %p793_p10, %p790_p9 }
  0x13   : > { %798 = shalt.err (!%p795_p11)
}
  0x14   : > { %s799_s23 = scalar_lea.vmem %s104_s12, 1024  ;;  %p807_p1 = scmp.lt.s32.totalorder %s104_s12, %s104_s12 }
  0x15   : > { %p800_p12 = scmp.ne.s32.totalorder %s104_s12, %s799_s23  ;;  %p808_p4 = scmp.lt.s32.totalorder %s799_s23, %s799_s23 }
  0x17   : > { %p802_p13 = pnand %p800_p12, %p788_p7  ;;  %p809_p3 = por %p808_p4, %p807_p1 }
  0x19   : > { %p803_p0 = pneg %p802_p13 }
  0x1b   : > { %p810_p2 = pnand %p809_p3, %p803_p0 }
  0x1d   : > { %813 = shalt.err (!%p810_p2)
}
  0x1e   : > { %s827_s24 = smov 64   ;;  %s828_s25 = smov 4  }
  0x1f   : > { %748 = dma.hbm_to_vmem [thread:$0]  (!%p866_p5), %s960_s1, 1024, %s104_s12, [#allocation3], %s827_s24, %s827_s24, %s828_s25  }
  0x20   : > { %p968_p6 = scmp.ne.s32.totalorder %s965_s13, 0 }
  0x21   : > { %p969_p8 = scmp.ne.s32.totalorder (!%p968_p6), %s966_s14, 0 }
  0x22   : > { %128 = sbr.rel (%p968_p6) target bundleno = 315 (0x13b), region = 28 }
  0x29   : > { %819 = dma.done.wait (%p969_p8), [#allocation3], 1024  }
  0x2a   : > { %821 = vsyncadd (%p969_p8), [#allocation3], 4294966272  ;;  %s623_s28 = sshll.u32 %s616_s10, 5  ;;  %v762_v0 = vld [vmem:[#allocation2] sm:$0xff]   ;;  %v763_v1 = vld [vmem:[#allocation2 + $0x8] sm:$0xff]  }
  0x2b   : > { %p151_p2 = scmp.lt.s32.totalorder %s623_s28, 95  ;;  %677 = vmatprep.subr.bf16.mxu0 %v762_v0  ;;  %725 = vmatprep.subr.bf16.mxu1 %v762_v0  ;;  %v764_v2 = vld [vmem:[#allocation2 + $0x10] sm:$0xff]   ;;  %v765_v3 = vld [vmem:[#allocation2 + $0x18] sm:$0xff]   ;;  %v766_v6 = vld [vmem:[#allocation2 + $0x20] sm:$0xff]  }
  0x2c   : > { %678 = vmatpush3.bf16.msra.mxu0 %v762_v0  ;;  %733 = vmatpush3.bf16.msra.mxu1 %v762_v0  ;;  %v767_v7 = vld [vmem:[#allocation2 + $0x28] sm:$0xff]   ;;  %v768_v8 = vld [vmem:[#allocation2 + $0x30] sm:$0xff]   ;;  %v769_v9 = vld [vmem:[#allocation2 + $0x38] sm:$0xff]  }
  0x2d   : > { %s971_s28 = smov (!%p151_p2, %s623_s28), 95  ;;  %679 = vmatprep.subr.bf16.mxu0 %v763_v1  ;;  %726 = vmatprep.subr.bf16.mxu1 %v763_v1 }
  0x2e   : > { %s624_s29 = sshll.u32 %s971_s28, 2  ;;  %s626_s5 = sshll.u32 %s971_s28, 3 }
  0x2f   : > { %s900_s4 = scalar_lea.vmem %s959_s0, %s624_s29  ;;  %s922_s8 = scalar_lea.vmem %s961_s2, %s626_s5 }
  0x30   : > { %680 = vmatpush3.bf16.msra.mxu0 %v763_v1  ;;  %734 = vmatpush3.bf16.msra.mxu1 %v763_v1  ;;  %v770_v4 = vld [vmem:[%s900_s4] sm:$0xff]   ;;  %v772_v10 = vld [vmem:[%s900_s4 + $0x8] sm:$0xff]   ;;  %v774_v12 = vld [vmem:[%s900_s4 + $0x10] sm:$0xff]  }
  0x31   : > { %681 = vmatprep.subr.bf16.mxu0 %v764_v2  ;;  %727 = vmatprep.subr.bf16.mxu1 %v764_v2  ;;  %v771_v5 = vld [vmem:[%s900_s4 + $0x40] sm:$0xff]   ;;  %v773_v11 = vld [vmem:[%s900_s4 + $0x48] sm:$0xff]   ;;  %v775_v13 = vld [vmem:[%s900_s4 + $0x50] sm:$0xff]  }
  0x32   : > { %693 = vmatprep.mubr.bf16.mxu0 %v770_v4  ;;  %709 = vmatprep.mubr.bf16.mxu1 %v771_v5  ;;  %v776_v14 = vld [vmem:[%s900_s4 + $0x18] sm:$0xff]   ;;  %v778_v16 = vld [vmem:[%s900_s4 + $0x20] sm:$0xff]   ;;  %v780_v18 = vld [vmem:[%s900_s4 + $0x28] sm:$0xff]  }
  0x33   : > { %v777_v15 = vld [vmem:[%s900_s4 + $0x58] sm:$0xff]   ;;  %v779_v17 = vld [vmem:[%s900_s4 + $0x60] sm:$0xff]   ;;  %v781_v19 = vld [vmem:[%s900_s4 + $0x68] sm:$0xff]  }
  0x34   : > { %682 = vmatpush3.bf16.msra.mxu0 %v764_v2  ;;  %735 = vmatpush3.bf16.msra.mxu1 %v764_v2  ;;  %v782_v20 = vld [vmem:[%s900_s4 + $0x30] sm:$0xff]   ;;  %v784_v22 = vld [vmem:[%s900_s4 + $0x38] sm:$0xff]  }
  0x35   : > { %683 = vmatprep.subr.bf16.mxu0 %v765_v3  ;;  %728 = vmatprep.subr.bf16.mxu1 %v765_v3  ;;  %v783_v21 = vld [vmem:[%s900_s4 + $0x70] sm:$0xff]   ;;  %v785_v23 = vld [vmem:[%s900_s4 + $0x78] sm:$0xff]  }
  0x38   : > { %684 = vmatpush3.bf16.msra.mxu0 %v765_v3  ;;  %736 = vmatpush3.bf16.msra.mxu1 %v765_v3 }
  0x39   : > { %685 = vmatprep.subr.bf16.mxu0 %v766_v6  ;;  %729 = vmatprep.subr.bf16.mxu1 %v766_v6 }
  0x3c   : > { %686 = vmatpush3.bf16.msra.mxu0 %v766_v6  ;;  %737 = vmatpush3.bf16.msra.mxu1 %v766_v6 }
  0x3d   : > { %687 = vmatprep.subr.bf16.mxu0 %v767_v7  ;;  %730 = vmatprep.subr.bf16.mxu1 %v767_v7 }
  0x40   : > { %688 = vmatpush3.bf16.msra.mxu0 %v767_v7  ;;  %738 = vmatpush3.bf16.msra.mxu1 %v767_v7 }
  0x41   : > { %689 = vmatprep.subr.bf16.mxu0 %v768_v8  ;;  %731 = vmatprep.subr.bf16.mxu1 %v768_v8 }
  0x44   : > { %690 = vmatpush3.bf16.msra.mxu0 %v768_v8  ;;  %739 = vmatpush3.bf16.msra.mxu1 %v768_v8 }
  0x45   : > { %691 = vmatprep.subr.bf16.mxu0 %v769_v9  ;;  %732 = vmatprep.subr.bf16.mxu1 %v769_v9 }
  0x48   : > { %692 = vmatpush3.bf16.msra.mxu0 %v769_v9  ;;  %740 = vmatpush3.bf16.msra.mxu1 %v769_v9 }
  0x4b   : > { %694 = vmatmul.mubr.bf16.vlgmr.msra.gmra.mrb[0].mxu0 %v772_v10  ;;  %710 = vmatmul.mubr.bf16.vlgmr.msra.gmra.mrb[0].mxu1 %v773_v11 }
  0x4c   : > { %697 = vmatprep.mubr.bf16.mxu0 %v774_v12  ;;  %713 = vmatprep.mubr.bf16.mxu1 %v775_v13 }
  0x53   : > { %698 = vmatmul.mubr.bf16.gmra.mrb[4].mxu0 %v776_v14  ;;  %714 = vmatmul.mubr.bf16.gmra.mrb[4].mxu1 %v777_v15 }
  0x54   : > { %701 = vmatprep.mubr.bf16.mxu0 %v778_v16  ;;  %717 = vmatprep.mubr.bf16.mxu1 %v779_v17 }
  0x5b   : > { %702 = vmatmul.mubr.bf16.gmra.mrb[8].mxu0 %v780_v18  ;;  %718 = vmatmul.mubr.bf16.gmra.mrb[8].mxu1 %v781_v19 }
  0x5c   : > { %705 = vmatprep.mubr.bf16.mxu0 %v782_v20  ;;  %721 = vmatprep.mubr.bf16.mxu1 %v783_v21 }
  0x63   : > { %706 = vmatmul.mubr.bf16.gmra.mrb[12].mxu0 %v784_v22  ;;  %722 = vmatmul.mubr.bf16.gmra.mrb[12].mxu1 %v785_v23 }
 0x11e   : > { %v695_v24 = vpop.f32.mrb[0].mxu0  ;;  %v711_v25 = vpop.f32.mrb[0].mxu1 }
 0x11f   : > { %518 = vst [vmem:[%s922_s8 + $0x10] sm:$0xff] %v695_v24  ;;  %534 = vst [vmem:[%s922_s8 + $0x90] sm:$0xff] %v711_v25  ;;  %v389_v26 = vpop.f32.mrb[1].mxu0  ;;  %v453_v27 = vpop.f32.mrb[1].mxu1 }
 0x120   : > { %516 = vst [vmem:[%s922_s8] sm:$0xff] %v389_v26  ;;  %532 = vst [vmem:[%s922_s8 + $0x80] sm:$0xff] %v453_v27  ;;  %v696_v28 = vpop.f32.mrb[2].mxu0  ;;  %v712_v29 = vpop.f32.mrb[2].mxu1 }
 0x121   : > { %519 = vst [vmem:[%s922_s8 + $0x18] sm:$0xff] %v696_v28  ;;  %535 = vst [vmem:[%s922_s8 + $0x98] sm:$0xff] %v712_v29  ;;  %v392_v30 = vpop.f32.mrb[3].mxu0  ;;  %v456_v31 = vpop.f32.mrb[3].mxu1 }
 0x122   : > { %517 = vst [vmem:[%s922_s8 + $0x8] sm:$0xff] %v392_v30  ;;  %533 = vst [vmem:[%s922_s8 + $0x88] sm:$0xff] %v456_v31 }
 0x126   : > { %v699_v32 = vpop.f32.mrb[4].mxu0  ;;  %v715_v33 = vpop.f32.mrb[4].mxu1 }
 0x127   : > { %522 = vst [vmem:[%s922_s8 + $0x30] sm:$0xff] %v699_v32  ;;  %538 = vst [vmem:[%s922_s8 + $0xb0] sm:$0xff] %v715_v33  ;;  %v405_v34 = vpop.f32.mrb[5].mxu0  ;;  %v469_v35 = vpop.f32.mrb[5].mxu1 }
 0x128   : > { %520 = vst [vmem:[%s922_s8 + $0x20] sm:$0xff] %v405_v34  ;;  %536 = vst [vmem:[%s922_s8 + $0xa0] sm:$0xff] %v469_v35  ;;  %v700_v36 = vpop.f32.mrb[6].mxu0  ;;  %v716_v37 = vpop.f32.mrb[6].mxu1 }
 0x129   : > { %523 = vst [vmem:[%s922_s8 + $0x38] sm:$0xff] %v700_v36  ;;  %539 = vst [vmem:[%s922_s8 + $0xb8] sm:$0xff] %v716_v37  ;;  %v408_v38 = vpop.f32.mrb[7].mxu0  ;;  %v472_v39 = vpop.f32.mrb[7].mxu1 }
 0x12a   : > { %521 = vst [vmem:[%s922_s8 + $0x28] sm:$0xff] %v408_v38  ;;  %537 = vst [vmem:[%s922_s8 + $0xa8] sm:$0xff] %v472_v39 }
 0x12e   : > { %v703_v40 = vpop.f32.mrb[8].mxu0  ;;  %v719_v41 = vpop.f32.mrb[8].mxu1 }
 0x12f   : > { %526 = vst [vmem:[%s922_s8 + $0x50] sm:$0xff] %v703_v40  ;;  %542 = vst [vmem:[%s922_s8 + $0xd0] sm:$0xff] %v719_v41  ;;  %v421_v42 = vpop.f32.mrb[9].mxu0  ;;  %v485_v43 = vpop.f32.mrb[9].mxu1 }
 0x130   : > { %524 = vst [vmem:[%s922_s8 + $0x40] sm:$0xff] %v421_v42  ;;  %540 = vst [vmem:[%s922_s8 + $0xc0] sm:$0xff] %v485_v43  ;;  %v704_v44 = vpop.f32.mrb[10].mxu0  ;;  %v720_v45 = vpop.f32.mrb[10].mxu1 }
 0x131   : > { %527 = vst [vmem:[%s922_s8 + $0x58] sm:$0xff] %v704_v44  ;;  %543 = vst [vmem:[%s922_s8 + $0xd8] sm:$0xff] %v720_v45  ;;  %v424_v46 = vpop.f32.mrb[11].mxu0  ;;  %v488_v47 = vpop.f32.mrb[11].mxu1 }
 0x132   : > { %525 = vst [vmem:[%s922_s8 + $0x48] sm:$0xff] %v424_v46  ;;  %541 = vst [vmem:[%s922_s8 + $0xc8] sm:$0xff] %v488_v47 }
 0x136   : > { %v707_v48 = vpop.f32.mrb[12].mxu0  ;;  %v723_v49 = vpop.f32.mrb[12].mxu1 }
 0x137   : > { %530 = vst [vmem:[%s922_s8 + $0x70] sm:$0xff] %v707_v48  ;;  %546 = vst [vmem:[%s922_s8 + $0xf0] sm:$0xff] %v723_v49  ;;  %v437_v50 = vpop.f32.mrb[13].mxu0  ;;  %v501_v51 = vpop.f32.mrb[13].mxu1 }
 0x138   : > { %528 = vst [vmem:[%s922_s8 + $0x60] sm:$0xff] %v437_v50  ;;  %544 = vst [vmem:[%s922_s8 + $0xe0] sm:$0xff] %v501_v51  ;;  %v708_v52 = vpop.f32.mrb[14].mxu0  ;;  %v724_v53 = vpop.f32.mrb[14].mxu1 }
 0x139   : > { %531 = vst [vmem:[%s922_s8 + $0x78] sm:$0xff] %v708_v52  ;;  %547 = vst [vmem:[%s922_s8 + $0xf8] sm:$0xff] %v724_v53  ;;  %v440_v54 = vpop.f32.mrb[15].mxu0  ;;  %v504_v55 = vpop.f32.mrb[15].mxu1 }
 0x13a   : > { %529 = vst [vmem:[%s922_s8 + $0x68] sm:$0xff] %v440_v54  ;;  %545 = vst [vmem:[%s922_s8 + $0xe8] sm:$0xff] %v504_v55 }
 0x13b PF: > { %s13_s9 = sadd.s32 1, %s824_s9  }
 0x13c   : > { %p10_p3 = scmp.ge.s32.totalorder %s13_s9, 5  }
 0x13e   :  { %12 = sbr.rel (!%p10_p3) target bundleno = 1 (0x1), region = 63 }
 0x145   :  { %570 = vsyncpa [#allocation3], 1 }
 0x146   :  { %572 = vsyncpa [#allocation3 + $0x1], 1 }

// kernel: _lambda_.4
= control target key start
LH: loop header
LB: loop body
LE: loop exit
PB: predicated region body
PF: predicated region fallthrough
CT: control target
= control target key end

     0   :  { %s1693_s9 = smov 0   ;;  %s1912_s0 = inlined_call_operand.vmem [shape: bf16[512,512], index: 0, kind: input, shape index: {}]   ;;  %s1913_s1 = inlined_call_operand.vmem [shape: bf16[512,128], index: 1, kind: input, shape index: {}]   ;;  %s1914_s2 = inlined_call_operand.vmem [shape: f32[512,128], index: 2, kind: output, shape index: {}]  }
   0x1 LB: > { %s1201_s10 = sadd.s32 4294967295, %s1676_s9   ;;  %p1205_p0 = scmp.ge.s32.totalorder %s1676_s9, 1  ;;  %s1676_s9 = sphi %s1693_s9, %s12_s9  }
   0x2   : > { %p114_p1 = scmp.lt.s32.totalorder %s1676_s9, 3 }
   0x4   : > { %p115_p2 = pnand %p1205_p0, %p114_p1 }
   0x5   : > { %v1542_v0 = vld [vmem:[%s1913_s1 + $0x40] sm:$0xff] (!%p115_p2)   ;;  %v1546_v4 = vld [vmem:[%s1913_s1 + $0x48] sm:$0xff] (!%p115_p2)   ;;  %v1550_v8 = vld [vmem:[%s1913_s1 + $0x50] sm:$0xff] (!%p115_p2)   ;;  %s1206_s17 = sshll.u32 (!%p115_p2), %s1201_s10, 5 }
   0x6   : > { %118 = sbr.rel (%p115_p2) target bundleno = 380 (0x17c), region = 28  ;;  %v1543_v1 = vld [vmem:[%s1913_s1 + $0xc0] sm:$0xff] (!%p115_p2)   ;;  %1310 = vmatprep.subr.bf16.mxu0 (!%p115_p2), %v1542_v0  ;;  %v1547_v5 = vld [vmem:[%s1913_s1 + $0xc8] sm:$0xff] (!%p115_p2)   ;;  %v1551_v9 = vld [vmem:[%s1913_s1 + $0xd0] sm:$0xff] (!%p115_p2)   ;;  %p138_p3 = scmp.lt.s32.totalorder (!%p115_p2), %s1206_s17, 63 }
   0x7   : > { %v1544_v2 = vld [vmem:[%s1913_s1] sm:$0xff] (!%p115_p2)   ;;  %1422 = vmatprep.subr.bf16.mxu1 (!%p115_p2), %v1543_v1  ;;  %v1548_v6 = vld [vmem:[%s1913_s1 + $0x8] sm:$0xff] (!%p115_p2)   ;;  %v1552_v10 = vld [vmem:[%s1913_s1 + $0x10] sm:$0xff] (!%p115_p2)  }
   0x8   : > { %v1545_v3 = vld [vmem:[%s1913_s1 + $0x80] sm:$0xff] (!%p115_p2)   ;;  %1311 = vmatpush3.bf16.msra.mxu0 (!%p115_p2), %v1544_v2  ;;  %v1549_v7 = vld [vmem:[%s1913_s1 + $0x88] sm:$0xff] (!%p115_p2)   ;;  %v1553_v11 = vld [vmem:[%s1913_s1 + $0x90] sm:$0xff] (!%p115_p2)  }
   0x9   : > { %1423 = vmatpush3.bf16.msra.mxu1 (!%p115_p2), %v1545_v3  ;;  %1312 = vmatprep.subr.bf16.mxu0 (!%p115_p2), %v1546_v4  ;;  %v1554_v12 = vld [vmem:[%s1913_s1 + $0x58] sm:$0xff] (!%p115_p2)   ;;  %v1558_v16 = vld [vmem:[%s1913_s1 + $0x60] sm:$0xff] (!%p115_p2)   ;;  %v1562_v20 = vld [vmem:[%s1913_s1 + $0x68] sm:$0xff] (!%p115_p2)  }
   0xa   : > { %1424 = vmatprep.subr.bf16.mxu1 (!%p115_p2), %v1547_v5  ;;  %v1555_v13 = vld [vmem:[%s1913_s1 + $0xd8] sm:$0xff] (!%p115_p2)   ;;  %v1559_v17 = vld [vmem:[%s1913_s1 + $0xe0] sm:$0xff] (!%p115_p2)   ;;  %v1563_v21 = vld [vmem:[%s1913_s1 + $0xe8] sm:$0xff] (!%p115_p2)  }
   0xb   : > { %v1556_v14 = vld [vmem:[%s1913_s1 + $0x18] sm:$0xff] (!%p115_p2)   ;;  %v1560_v18 = vld [vmem:[%s1913_s1 + $0x20] sm:$0xff] (!%p115_p2)   ;;  %v1564_v22 = vld [vmem:[%s1913_s1 + $0x28] sm:$0xff] (!%p115_p2)  }
   0xc   : > { %1313 = vmatpush3.bf16.msra.mxu0 (!%p115_p2), %v1548_v6  ;;  %v1557_v15 = vld [vmem:[%s1913_s1 + $0x98] sm:$0xff] (!%p115_p2)   ;;  %v1561_v19 = vld [vmem:[%s1913_s1 + $0xa0] sm:$0xff] (!%p115_p2)   ;;  %v1565_v23 = vld [vmem:[%s1913_s1 + $0xa8] sm:$0xff] (!%p115_p2)  }
   0xd   : > { %1425 = vmatpush3.bf16.msra.mxu1 %v1549_v7  ;;  %1314 = vmatprep.subr.bf16.mxu0 %v1550_v8  ;;  %s1916_s17 = smov (!%p138_p3, %s1206_s17), 63  ;;  %v1566_v24 = vld [vmem:[%s1913_s1 + $0x70] sm:$0xff]   ;;  %v1570_v28 = vld [vmem:[%s1913_s1 + $0x78] sm:$0xff]  }
   0xe   : > { %1426 = vmatprep.subr.bf16.mxu1 %v1551_v9  ;;  %v1567_v25 = vld [vmem:[%s1913_s1 + $0xf0] sm:$0xff]   ;;  %s1309_s13 = sshll.u32 %s1916_s17, 4  ;;  %v1571_v29 = vld [vmem:[%s1913_s1 + $0xf8] sm:$0xff]   ;;  %s1210_s27 = sshll.u32 %s1916_s17, 3 }
   0xf   : > { %v1568_v26 = vld [vmem:[%s1913_s1 + $0x30] sm:$0xff]   ;;  %s1799_s23 = scalar_lea.vmem %s1912_s0, %s1309_s13  ;;  %v1572_v30 = vld [vmem:[%s1913_s1 + $0x38] sm:$0xff]   ;;  %s1875_s30 = scalar_lea.vmem %s1914_s2, %s1210_s27 }
  0x10   : > { %1315 = vmatpush3.bf16.msra.mxu0 %v1552_v10  ;;  %v1569_v27 = vld [vmem:[%s1913_s1 + $0xb0] sm:$0xff]   ;;  %v1573_v31 = vld [vmem:[%s1913_s1 + $0xb8] sm:$0xff]  }
  0x11   : > { %1427 = vmatpush3.bf16.msra.mxu1 %v1553_v11  ;;  %1316 = vmatprep.subr.bf16.mxu0 %v1554_v12  ;;  %v1574_v32 = vld [vmem:[%s1799_s23] ss:$16 sps:$4 sm:$0xff]   ;;  %v1576_v33 = vld [vmem:[%s1799_s23 + $0x4] ss:$16 sps:$4 sm:$0xff]   ;;  %v1577_v34 = vld [vmem:[%s1799_s23 + $0x8] ss:$16 sps:$4 sm:$0xff]  }
  0x12   : > { %1428 = vmatprep.subr.bf16.mxu1 %v1555_v13  ;;  %v1579_v35 = vld [vmem:[%s1799_s23 + $0xc] ss:$16 sps:$4 sm:$0xff]   ;;  %823 = vmatprep.mubr.bf16.mxu0 %v1576_v33  ;;  %v1580_v36 = vld [vmem:[%s1799_s23 + $0x24] ss:$16 sps:$4 sm:$0xff]   ;;  %v1584_v38 = vld [vmem:[%s1799_s23 + $0x20] ss:$16 sps:$4 sm:$0xff]  }
  0x13   : > { %984 = vmatprep.mubr.bf16.mxu1 %v1579_v35  ;;  %v1582_v37 = vld [vmem:[%s1799_s23 + $0x2c] ss:$16 sps:$4 sm:$0xff]   ;;  %v1585_v39 = vld [vmem:[%s1799_s23 + $0x28] ss:$16 sps:$4 sm:$0xff]   ;;  %v1586_v40 = vld [vmem:[%s1799_s23 + $0x44] ss:$16 sps:$4 sm:$0xff]  }
  0x14   : > { %1317 = vmatpush3.bf16.msra.mxu0 %v1556_v14  ;;  %v1588_v41 = vld [vmem:[%s1799_s23 + $0x4c] ss:$16 sps:$4 sm:$0xff]   ;;  %v1590_v42 = vld [vmem:[%s1799_s23 + $0x40] ss:$16 sps:$4 sm:$0xff]   ;;  %v1591_v43 = vld [vmem:[%s1799_s23 + $0x48] ss:$16 sps:$4 sm:$0xff]  }
  0x15   : > { %1429 = vmatpush3.bf16.msra.mxu1 %v1557_v15  ;;  %1318 = vmatprep.subr.bf16.mxu0 %v1558_v16  ;;  %v1592_v44 = vld [vmem:[%s1799_s23 + $0x64] ss:$16 sps:$4 sm:$0xff]   ;;  %v1594_v45 = vld [vmem:[%s1799_s23 + $0x6c] ss:$16 sps:$4 sm:$0xff]   ;;  %v1596_v46 = vld [vmem:[%s1799_s23 + $0x60] ss:$16 sps:$4 sm:$0xff]  }
  0x16   : > { %1430 = vmatprep.subr.bf16.mxu1 %v1559_v17  ;;  %v1597_v47 = vld [vmem:[%s1799_s23 + $0x68] ss:$16 sps:$4 sm:$0xff]   ;;  %v1598_v48 = vld [vmem:[%s1799_s23 + $0x84] ss:$16 sps:$4 sm:$0xff]   ;;  %v1600_v49 = vld [vmem:[%s1799_s23 + $0x8c] ss:$16 sps:$4 sm:$0xff]  }
  0x17   : > { %v1602_v50 = vld [vmem:[%s1799_s23 + $0x80] ss:$16 sps:$4 sm:$0xff]   ;;  %v1603_v51 = vld [vmem:[%s1799_s23 + $0x88] ss:$16 sps:$4 sm:$0xff]   ;;  %v1604_v52 = vld [vmem:[%s1799_s23 + $0xa4] ss:$16 sps:$4 sm:$0xff]  }
  0x18   : > { %1319 = vmatpush3.bf16.msra.mxu0 %v1560_v18  ;;  %v1606_v53 = vld [vmem:[%s1799_s23 + $0xac] ss:$16 sps:$4 sm:$0xff]   ;;  %v1608_v54 = vld [vmem:[%s1799_s23 + $0xa0] ss:$16 sps:$4 sm:$0xff]   ;;  %v1609_v55 = vld [vmem:[%s1799_s23 + $0xa8] ss:$16 sps:$4 sm:$0xff]  }
  0x19   : > { %1431 = vmatpush3.bf16.msra.mxu1 %v1561_v19  ;;  %1320 = vmatprep.subr.bf16.mxu0 %v1562_v20  ;;  %v1610_v56 = vld [vmem:[%s1799_s23 + $0xc4] ss:$16 sps:$4 sm:$0xff]   ;;  %v1612_v57 = vld [vmem:[%s1799_s23 + $0xcc] ss:$16 sps:$4 sm:$0xff]   ;;  %v1614_v58 = vld [vmem:[%s1799_s23 + $0xc0] ss:$16 sps:$4 sm:$0xff]  }
  0x1a   : > { %1432 = vmatprep.subr.bf16.mxu1 %v1563_v21  ;;  %v1615_v59 = vld [vmem:[%s1799_s23 + $0xc8] ss:$16 sps:$4 sm:$0xff]   ;;  %v1616_v60 = vld [vmem:[%s1799_s23 + $0xe4] ss:$16 sps:$4 sm:$0xff]   ;;  %v1618_v61 = vld [vmem:[%s1799_s23 + $0xec] ss:$16 sps:$4 sm:$0xff]  }
  0x1b   : > { %v1620_v62 = vld [vmem:[%s1799_s23 + $0xe0] ss:$16 sps:$4 sm:$0xff]   ;;  %v1621_v63 = vld [vmem:[%s1799_s23 + $0xe8] ss:$16 sps:$4 sm:$0xff]   ;;  %v1622_v0 = vld [vmem:[%s1799_s23 + $0x104] ss:$16 sps:$4 sm:$0xff]  }
  0x1c   : > { %1321 = vmatpush3.bf16.msra.mxu0 %v1564_v22  ;;  %v1624_v1 = vld [vmem:[%s1799_s23 + $0x10c] ss:$16 sps:$4 sm:$0xff]   ;;  %v1626_v2 = vld [vmem:[%s1799_s23 + $0x100] ss:$16 sps:$4 sm:$0xff]   ;;  %v1627_v3 = vld [vmem:[%s1799_s23 + $0x108] ss:$16 sps:$4 sm:$0xff]  }
  0x1d   : > { %1433 = vmatpush3.bf16.msra.mxu1 %v1565_v23  ;;  %1322 = vmatprep.subr.bf16.mxu0 %v1566_v24  ;;  %v1628_v4 = vld [vmem:[%s1799_s23 + $0x124] ss:$16 sps:$4 sm:$0xff]   ;;  %v1630_v5 = vld [vmem:[%s1799_s23 + $0x12c] ss:$16 sps:$4 sm:$0xff]   ;;  %v1632_v6 = vld [vmem:[%s1799_s23 + $0x120] ss:$16 sps:$4 sm:$0xff]  }
  0x1e   : > { %1434 = vmatprep.subr.bf16.mxu1 %v1567_v25  ;;  %v1633_v7 = vld [vmem:[%s1799_s23 + $0x128] ss:$16 sps:$4 sm:$0xff]   ;;  %v1634_v8 = vld [vmem:[%s1799_s23 + $0x144] ss:$16 sps:$4 sm:$0xff]   ;;  %v1636_v9 = vld [vmem:[%s1799_s23 + $0x14c] ss:$16 sps:$4 sm:$0xff]  }
  0x1f   : > { %v1638_v10 = vld [vmem:[%s1799_s23 + $0x140] ss:$16 sps:$4 sm:$0xff]   ;;  %v1639_v11 = vld [vmem:[%s1799_s23 + $0x148] ss:$16 sps:$4 sm:$0xff]   ;;  %v1640_v12 = vld [vmem:[%s1799_s23 + $0x164] ss:$16 sps:$4 sm:$0xff]  }
  0x20   : > { %1323 = vmatpush3.bf16.msra.mxu0 %v1568_v26  ;;  %v1642_v13 = vld [vmem:[%s1799_s23 + $0x16c] ss:$16 sps:$4 sm:$0xff]   ;;  %v1644_v14 = vld [vmem:[%s1799_s23 + $0x160] ss:$16 sps:$4 sm:$0xff]   ;;  %v1645_v15 = vld [vmem:[%s1799_s23 + $0x168] ss:$16 sps:$4 sm:$0xff]  }
  0x21   : > { %1435 = vmatpush3.bf16.msra.mxu1 %v1569_v27  ;;  %1324 = vmatprep.subr.bf16.mxu0 %v1570_v28  ;;  %v1646_v16 = vld [vmem:[%s1799_s23 + $0x184] ss:$16 sps:$4 sm:$0xff]   ;;  %v1648_v17 = vld [vmem:[%s1799_s23 + $0x18c] ss:$16 sps:$4 sm:$0xff]   ;;  %v1650_v18 = vld [vmem:[%s1799_s23 + $0x180] ss:$16 sps:$4 sm:$0xff]  }
  0x22   : > { %1436 = vmatprep.subr.bf16.mxu1 %v1571_v29  ;;  %v1651_v19 = vld [vmem:[%s1799_s23 + $0x188] ss:$16 sps:$4 sm:$0xff]   ;;  %v1652_v20 = vld [vmem:[%s1799_s23 + $0x1a4] ss:$16 sps:$4 sm:$0xff]   ;;  %v1654_v21 = vld [vmem:[%s1799_s23 + $0x1ac] ss:$16 sps:$4 sm:$0xff]  }
  0x23   : > { %v1656_v22 = vld [vmem:[%s1799_s23 + $0x1a0] ss:$16 sps:$4 sm:$0xff]   ;;  %v1657_v23 = vld [vmem:[%s1799_s23 + $0x1a8] ss:$16 sps:$4 sm:$0xff]   ;;  %v1658_v24 = vld [vmem:[%s1799_s23 + $0x1c4] ss:$16 sps:$4 sm:$0xff]  }
  0x24   : > { %1325 = vmatpush3.bf16.msra.mxu0 %v1572_v30  ;;  %v1660_v25 = vld [vmem:[%s1799_s23 + $0x1cc] ss:$16 sps:$4 sm:$0xff]   ;;  %v1662_v26 = vld [vmem:[%s1799_s23 + $0x1c0] ss:$16 sps:$4 sm:$0xff]   ;;  %v1663_v27 = vld [vmem:[%s1799_s23 + $0x1c8] ss:$16 sps:$4 sm:$0xff]  }
  0x25   : > { %1437 = vmatpush3.bf16.msra.mxu1 %v1573_v31  ;;  %v1664_v28 = vld [vmem:[%s1799_s23 + $0x1e4] ss:$16 sps:$4 sm:$0xff]   ;;  %v1666_v29 = vld [vmem:[%s1799_s23 + $0x1ec] ss:$16 sps:$4 sm:$0xff]   ;;  %v1668_v30 = vld [vmem:[%s1799_s23 + $0x1e0] ss:$16 sps:$4 sm:$0xff]  }
  0x26   : > { %v1669_v31 = vld [vmem:[%s1799_s23 + $0x1e8] ss:$16 sps:$4 sm:$0xff]  }
  0x27   : > { %824 = vmatmul.mubr.bf16.vlgmr.msra.gmra.mrb[0].mxu0 %v1574_v32 }
  0x28   : > { %985 = vmatmul.mubr.bf16.vlgmr.msra.gmra.mrb[0].mxu1 %v1577_v34  ;;  %831 = vmatprep.mubr.bf16.mxu0 %v1580_v36 }
  0x29   : > { %992 = vmatprep.mubr.bf16.mxu1 %v1582_v37 }
  0x2f   : > { %832 = vmatmul.mubr.bf16.gmra.mrb[4].mxu0 %v1584_v38 }
  0x30   : > { %993 = vmatmul.mubr.bf16.gmra.mrb[4].mxu1 %v1585_v39  ;;  %839 = vmatprep.mubr.bf16.mxu0 %v1586_v40 }
  0x31   : > { %1000 = vmatprep.mubr.bf16.mxu1 %v1588_v41 }
  0x37   : > { %840 = vmatmul.mubr.bf16.gmra.mrb[8].mxu0 %v1590_v42 }
  0x38   : > { %1001 = vmatmul.mubr.bf16.gmra.mrb[8].mxu1 %v1591_v43  ;;  %847 = vmatprep.mubr.bf16.mxu0 %v1592_v44 }
  0x39   : > { %1008 = vmatprep.mubr.bf16.mxu1 %v1594_v45 }
  0x3f   : > { %848 = vmatmul.mubr.bf16.gmra.mrb[12].mxu0 %v1596_v46 }
  0x40   : > { %1009 = vmatmul.mubr.bf16.gmra.mrb[12].mxu1 %v1597_v47  ;;  %855 = vmatprep.mubr.bf16.mxu0 %v1598_v48 }
  0x41   : > { %1016 = vmatprep.mubr.bf16.mxu1 %v1600_v49 }
  0x47   : > { %856 = vmatmul.mubr.bf16.gmra.mrb[16].mxu0 %v1602_v50 }
  0x48   : > { %1017 = vmatmul.mubr.bf16.gmra.mrb[16].mxu1 %v1603_v51  ;;  %863 = vmatprep.mubr.bf16.mxu0 %v1604_v52 }
  0x49   : > { %1024 = vmatprep.mubr.bf16.mxu1 %v1606_v53 }
  0x4f   : > { %864 = vmatmul.mubr.bf16.gmra.mrb[20].mxu0 %v1608_v54 }
  0x50   : > { %1025 = vmatmul.mubr.bf16.gmra.mrb[20].mxu1 %v1609_v55  ;;  %871 = vmatprep.mubr.bf16.mxu0 %v1610_v56 }
  0x51   : > { %1032 = vmatprep.mubr.bf16.mxu1 %v1612_v57 }
  0x57   : > { %872 = vmatmul.mubr.bf16.gmra.mrb[24].mxu0 %v1614_v58 }
  0x58   : > { %1033 = vmatmul.mubr.bf16.gmra.mrb[24].mxu1 %v1615_v59  ;;  %879 = vmatprep.mubr.bf16.mxu0 %v1616_v60 }
  0x59   : > { %1040 = vmatprep.mubr.bf16.mxu1 %v1618_v61 }
  0x5f   : > { %880 = vmatmul.mubr.bf16.gmra.mrb[28].mxu0 %v1620_v62 }
  0x60   : > { %1041 = vmatmul.mubr.bf16.gmra.mrb[28].mxu1 %v1621_v63  ;;  %887 = vmatprep.mubr.bf16.mxu0 %v1622_v0 }
  0x61   : > { %1048 = vmatprep.mubr.bf16.mxu1 %v1624_v1 }
  0x67   : > { %888 = vmatmul.mubr.bf16.gmra.mrb[32].mxu0 %v1626_v2 }
  0x68   : > { %1049 = vmatmul.mubr.bf16.gmra.mrb[32].mxu1 %v1627_v3  ;;  %895 = vmatprep.mubr.bf16.mxu0 %v1628_v4 }
  0x69   : > { %1056 = vmatprep.mubr.bf16.mxu1 %v1630_v5 }
  0x6f   : > { %896 = vmatmul.mubr.bf16.gmra.mrb[36].mxu0 %v1632_v6 }
  0x70   : > { %1057 = vmatmul.mubr.bf16.gmra.mrb[36].mxu1 %v1633_v7  ;;  %903 = vmatprep.mubr.bf16.mxu0 %v1634_v8 }
  0x71   : > { %1064 = vmatprep.mubr.bf16.mxu1 %v1636_v9 }
  0x77   : > { %904 = vmatmul.mubr.bf16.gmra.mrb[40].mxu0 %v1638_v10 }
  0x78   : > { %1065 = vmatmul.mubr.bf16.gmra.mrb[40].mxu1 %v1639_v11  ;;  %911 = vmatprep.mubr.bf16.mxu0 %v1640_v12 }
  0x79   : > { %1072 = vmatprep.mubr.bf16.mxu1 %v1642_v13 }
  0x7f   : > { %912 = vmatmul.mubr.bf16.gmra.mrb[44].mxu0 %v1644_v14 }
  0x80   : > { %1073 = vmatmul.mubr.bf16.gmra.mrb[44].mxu1 %v1645_v15  ;;  %919 = vmatprep.mubr.bf16.mxu0 %v1646_v16 }
  0x81   : > { %1080 = vmatprep.mubr.bf16.mxu1 %v1648_v17 }
  0x87   : > { %920 = vmatmul.mubr.bf16.gmra.mrb[48].mxu0 %v1650_v18 }
  0x88   : > { %1081 = vmatmul.mubr.bf16.gmra.mrb[48].mxu1 %v1651_v19  ;;  %927 = vmatprep.mubr.bf16.mxu0 %v1652_v20 }
  0x89   : > { %1088 = vmatprep.mubr.bf16.mxu1 %v1654_v21 }
  0x8f   : > { %928 = vmatmul.mubr.bf16.gmra.mrb[52].mxu0 %v1656_v22 }
  0x90   : > { %1089 = vmatmul.mubr.bf16.gmra.mrb[52].mxu1 %v1657_v23  ;;  %935 = vmatprep.mubr.bf16.mxu0 %v1658_v24 }
  0x91   : > { %1096 = vmatprep.mubr.bf16.mxu1 %v1660_v25 }
  0x97   : > { %936 = vmatmul.mubr.bf16.gmra.mrb[56].mxu0 %v1662_v26 }
  0x98   : > { %1097 = vmatmul.mubr.bf16.gmra.mrb[56].mxu1 %v1663_v27  ;;  %943 = vmatprep.mubr.bf16.mxu0 %v1664_v28 }
  0x99   : > { %1104 = vmatprep.mubr.bf16.mxu1 %v1666_v29 }
  0x9f   : > { %944 = vmatmul.mubr.bf16.gmra.mrb[60].mxu0 %v1668_v30 }
  0xa0   : > { %1105 = vmatmul.mubr.bf16.gmra.mrb[60].mxu1 %v1669_v31 }
  0xfa   : > { %v1326_v32 = vpop.f32.mrb[0].mxu0 }
  0xfb   : > { %v1438_v33 = vpop.f32.mrb[0].mxu1  ;;  %v1327_v34 = vpop.f32.mrb[1].mxu0 }
  0xfc   : > { %v1328_v35 = vadd.f32 %v1327_v34, %v1326_v32  ;;  %v1439_v36 = vpop.f32.mrb[1].mxu1  ;;  %v1329_v37 = vpop.f32.mrb[2].mxu0 }
  0xfd   : > { %v1440_v38 = vadd.f32 %v1439_v36, %v1438_v33  ;;  %v1441_v39 = vpop.f32.mrb[2].mxu1  ;;  %v1330_v40 = vpop.f32.mrb[3].mxu0 }
  0xfe   : > { %v1331_v41 = vadd.f32 %v1330_v40, %v1329_v37  ;;  %v1442_v42 = vpop.f32.mrb[3].mxu1 }
  0xff   : > { %v987_v43 = vadd.f32 %v1440_v38, %v1328_v35  ;;  %v1443_v44 = vadd.f32 %v1442_v42, %v1441_v39 }
 0x101   : > { %1113 = vst [vmem:[%s1875_s30] sm:$0xff] %v987_v43  ;;  %v990_v45 = vadd.f32 %v1443_v44, %v1331_v41 }
 0x102   : > { %v1332_v46 = vpop.f32.mrb[4].mxu0 }
 0x103   : > { %1114 = vst [vmem:[%s1875_s30 + $0x8] sm:$0xff] %v990_v45  ;;  %v1444_v47 = vpop.f32.mrb[4].mxu1  ;;  %v1333_v48 = vpop.f32.mrb[5].mxu0 }
 0x104   : > { %v1334_v49 = vadd.f32 %v1333_v48, %v1332_v46  ;;  %v1445_v50 = vpop.f32.mrb[5].mxu1  ;;  %v1335_v51 = vpop.f32.mrb[6].mxu0 }
 0x105   : > { %v1446_v52 = vadd.f32 %v1445_v50, %v1444_v47  ;;  %v1447_v53 = vpop.f32.mrb[6].mxu1  ;;  %v1336_v54 = vpop.f32.mrb[7].mxu0 }
 0x106   : > { %v1337_v55 = vadd.f32 %v1336_v54, %v1335_v51  ;;  %v1448_v56 = vpop.f32.mrb[7].mxu1 }
 0x107   : > { %v995_v57 = vadd.f32 %v1446_v52, %v1334_v49  ;;  %v1449_v58 = vadd.f32 %v1448_v56, %v1447_v53 }
 0x109   : > { %1115 = vst [vmem:[%s1875_s30 + $0x10] sm:$0xff] %v995_v57  ;;  %v998_v59 = vadd.f32 %v1449_v58, %v1337_v55 }
 0x10a   : > { %v1338_v60 = vpop.f32.mrb[8].mxu0 }
 0x10b   : > { %1116 = vst [vmem:[%s1875_s30 + $0x18] sm:$0xff] %v998_v59  ;;  %v1450_v61 = vpop.f32.mrb[8].mxu1  ;;  %v1339_v62 = vpop.f32.mrb[9].mxu0 }
 0x10c   : > { %v1340_v63 = vadd.f32 %v1339_v62, %v1338_v60  ;;  %v1451_v0 = vpop.f32.mrb[9].mxu1  ;;  %v1341_v1 = vpop.f32.mrb[10].mxu0 }
 0x10d   : > { %v1452_v2 = vadd.f32 %v1451_v0, %v1450_v61  ;;  %v1453_v3 = vpop.f32.mrb[10].mxu1  ;;  %v1342_v4 = vpop.f32.mrb[11].mxu0 }
 0x10e   : > { %v1343_v5 = vadd.f32 %v1342_v4, %v1341_v1  ;;  %v1454_v6 = vpop.f32.mrb[11].mxu1 }
 0x10f   : > { %v1003_v7 = vadd.f32 %v1452_v2, %v1340_v63  ;;  %v1455_v8 = vadd.f32 %v1454_v6, %v1453_v3 }
 0x111   : > { %1117 = vst [vmem:[%s1875_s30 + $0x20] sm:$0xff] %v1003_v7  ;;  %v1006_v9 = vadd.f32 %v1455_v8, %v1343_v5 }
 0x112   : > { %v1344_v10 = vpop.f32.mrb[12].mxu0 }
 0x113   : > { %1118 = vst [vmem:[%s1875_s30 + $0x28] sm:$0xff] %v1006_v9  ;;  %v1456_v11 = vpop.f32.mrb[12].mxu1  ;;  %v1345_v12 = vpop.f32.mrb[13].mxu0 }
 0x114   : > { %v1346_v13 = vadd.f32 %v1345_v12, %v1344_v10  ;;  %v1457_v14 = vpop.f32.mrb[13].mxu1  ;;  %v1347_v15 = vpop.f32.mrb[14].mxu0 }
 0x115   : > { %v1458_v16 = vadd.f32 %v1457_v14, %v1456_v11  ;;  %v1459_v17 = vpop.f32.mrb[14].mxu1  ;;  %v1348_v18 = vpop.f32.mrb[15].mxu0 }
 0x116   : > { %v1349_v19 = vadd.f32 %v1348_v18, %v1347_v15  ;;  %v1460_v20 = vpop.f32.mrb[15].mxu1 }
 0x117   : > { %v1011_v21 = vadd.f32 %v1458_v16, %v1346_v13  ;;  %v1461_v22 = vadd.f32 %v1460_v20, %v1459_v17 }
 0x119   : > { %1119 = vst [vmem:[%s1875_s30 + $0x30] sm:$0xff] %v1011_v21  ;;  %v1014_v23 = vadd.f32 %v1461_v22, %v1349_v19 }
 0x11a   : > { %v1350_v24 = vpop.f32.mrb[16].mxu0 }
 0x11b   : > { %1120 = vst [vmem:[%s1875_s30 + $0x38] sm:$0xff] %v1014_v23  ;;  %v1462_v25 = vpop.f32.mrb[16].mxu1  ;;  %v1351_v26 = vpop.f32.mrb[17].mxu0 }
 0x11c   : > { %v1352_v27 = vadd.f32 %v1351_v26, %v1350_v24  ;;  %v1463_v28 = vpop.f32.mrb[17].mxu1  ;;  %v1353_v29 = vpop.f32.mrb[18].mxu0 }
 0x11d   : > { %v1464_v30 = vadd.f32 %v1463_v28, %v1462_v25  ;;  %v1465_v31 = vpop.f32.mrb[18].mxu1  ;;  %v1354_v32 = vpop.f32.mrb[19].mxu0 }
 0x11e   : > { %v1355_v33 = vadd.f32 %v1354_v32, %v1353_v29  ;;  %v1466_v34 = vpop.f32.mrb[19].mxu1 }
 0x11f   : > { %v1019_v35 = vadd.f32 %v1464_v30, %v1352_v27  ;;  %v1467_v36 = vadd.f32 %v1466_v34, %v1465_v31 }
 0x121   : > { %1121 = vst [vmem:[%s1875_s30 + $0x40] sm:$0xff] %v1019_v35  ;;  %v1022_v37 = vadd.f32 %v1467_v36, %v1355_v33 }
 0x122   : > { %v1356_v38 = vpop.f32.mrb[20].mxu0 }
 0x123   : > { %1122 = vst [vmem:[%s1875_s30 + $0x48] sm:$0xff] %v1022_v37  ;;  %v1468_v39 = vpop.f32.mrb[20].mxu1  ;;  %v1357_v40 = vpop.f32.mrb[21].mxu0 }
 0x124   : > { %v1358_v41 = vadd.f32 %v1357_v40, %v1356_v38  ;;  %v1469_v42 = vpop.f32.mrb[21].mxu1  ;;  %v1359_v43 = vpop.f32.mrb[22].mxu0 }
 0x125   : > { %v1470_v44 = vadd.f32 %v1469_v42, %v1468_v39  ;;  %v1471_v45 = vpop.f32.mrb[22].mxu1  ;;  %v1360_v46 = vpop.f32.mrb[23].mxu0 }
 0x126   : > { %v1361_v47 = vadd.f32 %v1360_v46, %v1359_v43  ;;  %v1472_v48 = vpop.f32.mrb[23].mxu1 }
 0x127   : > { %v1027_v49 = vadd.f32 %v1470_v44, %v1358_v41  ;;  %v1473_v50 = vadd.f32 %v1472_v48, %v1471_v45 }
 0x129   : > { %1123 = vst [vmem:[%s1875_s30 + $0x50] sm:$0xff] %v1027_v49  ;;  %v1030_v51 = vadd.f32 %v1473_v50, %v1361_v47 }
 0x12a   : > { %v1362_v52 = vpop.f32.mrb[24].mxu0 }
 0x12b   : > { %1124 = vst [vmem:[%s1875_s30 + $0x58] sm:$0xff] %v1030_v51  ;;  %v1474_v53 = vpop.f32.mrb[24].mxu1  ;;  %v1363_v54 = vpop.f32.mrb[25].mxu0 }
 0x12c   : > { %v1364_v55 = vadd.f32 %v1363_v54, %v1362_v52  ;;  %v1475_v56 = vpop.f32.mrb[25].mxu1  ;;  %v1365_v57 = vpop.f32.mrb[26].mxu0 }
 0x12d   : > { %v1476_v58 = vadd.f32 %v1475_v56, %v1474_v53  ;;  %v1477_v59 = vpop.f32.mrb[26].mxu1  ;;  %v1366_v60 = vpop.f32.mrb[27].mxu0 }
 0x12e   : > { %v1367_v61 = vadd.f32 %v1366_v60, %v1365_v57  ;;  %v1478_v62 = vpop.f32.mrb[27].mxu1 }
 0x12f   : > { %v1035_v63 = vadd.f32 %v1476_v58, %v1364_v55  ;;  %v1479_v0 = vadd.f32 %v1478_v62, %v1477_v59 }
 0x131   : > { %1125 = vst [vmem:[%s1875_s30 + $0x60] sm:$0xff] %v1035_v63  ;;  %v1038_v1 = vadd.f32 %v1479_v0, %v1367_v61 }
 0x132   : > { %v1368_v2 = vpop.f32.mrb[28].mxu0 }
 0x133   : > { %1126 = vst [vmem:[%s1875_s30 + $0x68] sm:$0xff] %v1038_v1  ;;  %v1480_v3 = vpop.f32.mrb[28].mxu1  ;;  %v1369_v4 = vpop.f32.mrb[29].mxu0 }
 0x134   : > { %v1370_v5 = vadd.f32 %v1369_v4, %v1368_v2  ;;  %v1481_v6 = vpop.f32.mrb[29].mxu1  ;;  %v1371_v7 = vpop.f32.mrb[30].mxu0 }
 0x135   : > { %v1482_v8 = vadd.f32 %v1481_v6, %v1480_v3  ;;  %v1483_v9 = vpop.f32.mrb[30].mxu1  ;;  %v1372_v10 = vpop.f32.mrb[31].mxu0 }
 0x136   : > { %v1373_v11 = vadd.f32 %v1372_v10, %v1371_v7  ;;  %v1484_v12 = vpop.f32.mrb[31].mxu1 }
 0x137   : > { %v1043_v13 = vadd.f32 %v1482_v8, %v1370_v5  ;;  %v1485_v14 = vadd.f32 %v1484_v12, %v1483_v9 }
 0x139   : > { %1127 = vst [vmem:[%s1875_s30 + $0x70] sm:$0xff] %v1043_v13  ;;  %v1046_v15 = vadd.f32 %v1485_v14, %v1373_v11 }
 0x13a   : > { %v1374_v16 = vpop.f32.mrb[32].mxu0 }
 0x13b   : > { %1128 = vst [vmem:[%s1875_s30 + $0x78] sm:$0xff] %v1046_v15  ;;  %v1486_v17 = vpop.f32.mrb[32].mxu1  ;;  %v1375_v18 = vpop.f32.mrb[33].mxu0 }
 0x13c   : > { %v1376_v19 = vadd.f32 %v1375_v18, %v1374_v16  ;;  %v1487_v20 = vpop.f32.mrb[33].mxu1  ;;  %v1377_v21 = vpop.f32.mrb[34].mxu0 }
 0x13d   : > { %v1488_v22 = vadd.f32 %v1487_v20, %v1486_v17  ;;  %v1489_v23 = vpop.f32.mrb[34].mxu1  ;;  %v1378_v24 = vpop.f32.mrb[35].mxu0 }
 0x13e   : > { %v1379_v25 = vadd.f32 %v1378_v24, %v1377_v21  ;;  %v1490_v26 = vpop.f32.mrb[35].mxu1 }
 0x13f   : > { %v1051_v27 = vadd.f32 %v1488_v22, %v1376_v19  ;;  %v1491_v28 = vadd.f32 %v1490_v26, %v1489_v23 }
 0x141   : > { %1129 = vst [vmem:[%s1875_s30 + $0x80] sm:$0xff] %v1051_v27  ;;  %v1054_v29 = vadd.f32 %v1491_v28, %v1379_v25 }
 0x142   : > { %v1380_v30 = vpop.f32.mrb[36].mxu0 }
 0x143   : > { %1130 = vst [vmem:[%s1875_s30 + $0x88] sm:$0xff] %v1054_v29  ;;  %v1492_v31 = vpop.f32.mrb[36].mxu1  ;;  %v1381_v32 = vpop.f32.mrb[37].mxu0 }
 0x144   : > { %v1382_v33 = vadd.f32 %v1381_v32, %v1380_v30  ;;  %v1493_v34 = vpop.f32.mrb[37].mxu1  ;;  %v1383_v35 = vpop.f32.mrb[38].mxu0 }
 0x145   : > { %v1494_v36 = vadd.f32 %v1493_v34, %v1492_v31  ;;  %v1495_v37 = vpop.f32.mrb[38].mxu1  ;;  %v1384_v38 = vpop.f32.mrb[39].mxu0 }
 0x146   : > { %v1385_v39 = vadd.f32 %v1384_v38, %v1383_v35  ;;  %v1496_v40 = vpop.f32.mrb[39].mxu1 }
 0x147   : > { %v1059_v41 = vadd.f32 %v1494_v36, %v1382_v33  ;;  %v1497_v42 = vadd.f32 %v1496_v40, %v1495_v37 }
 0x149   : > { %1131 = vst [vmem:[%s1875_s30 + $0x90] sm:$0xff] %v1059_v41  ;;  %v1062_v43 = vadd.f32 %v1497_v42, %v1385_v39 }
 0x14a   : > { %v1386_v44 = vpop.f32.mrb[40].mxu0 }
 0x14b   : > { %1132 = vst [vmem:[%s1875_s30 + $0x98] sm:$0xff] %v1062_v43  ;;  %v1498_v45 = vpop.f32.mrb[40].mxu1  ;;  %v1387_v46 = vpop.f32.mrb[41].mxu0 }
 0x14c   : > { %v1388_v47 = vadd.f32 %v1387_v46, %v1386_v44  ;;  %v1499_v48 = vpop.f32.mrb[41].mxu1  ;;  %v1389_v49 = vpop.f32.mrb[42].mxu0 }
 0x14d   : > { %v1500_v50 = vadd.f32 %v1499_v48, %v1498_v45  ;;  %v1501_v51 = vpop.f32.mrb[42].mxu1  ;;  %v1390_v52 = vpop.f32.mrb[43].mxu0 }
 0x14e   : > { %v1391_v53 = vadd.f32 %v1390_v52, %v1389_v49  ;;  %v1502_v54 = vpop.f32.mrb[43].mxu1 }
 0x14f   : > { %v1067_v55 = vadd.f32 %v1500_v50, %v1388_v47  ;;  %v1503_v56 = vadd.f32 %v1502_v54, %v1501_v51 }
 0x151   : > { %1133 = vst [vmem:[%s1875_s30 + $0xa0] sm:$0xff] %v1067_v55  ;;  %v1070_v57 = vadd.f32 %v1503_v56, %v1391_v53 }
 0x152   : > { %v1392_v58 = vpop.f32.mrb[44].mxu0 }
 0x153   : > { %1134 = vst [vmem:[%s1875_s30 + $0xa8] sm:$0xff] %v1070_v57  ;;  %v1504_v59 = vpop.f32.mrb[44].mxu1  ;;  %v1393_v60 = vpop.f32.mrb[45].mxu0 }
 0x154   : > { %v1394_v61 = vadd.f32 %v1393_v60, %v1392_v58  ;;  %v1505_v62 = vpop.f32.mrb[45].mxu1  ;;  %v1395_v63 = vpop.f32.mrb[46].mxu0 }
 0x155   : > { %v1506_v0 = vadd.f32 %v1505_v62, %v1504_v59  ;;  %v1507_v1 = vpop.f32.mrb[46].mxu1  ;;  %v1396_v2 = vpop.f32.mrb[47].mxu0 }
 0x156   : > { %v1397_v3 = vadd.f32 %v1396_v2, %v1395_v63  ;;  %v1508_v4 = vpop.f32.mrb[47].mxu1 }
 0x157   : > { %v1075_v5 = vadd.f32 %v1506_v0, %v1394_v61  ;;  %v1509_v6 = vadd.f32 %v1508_v4, %v1507_v1 }
 0x159   : > { %1135 = vst [vmem:[%s1875_s30 + $0xb0] sm:$0xff] %v1075_v5  ;;  %v1078_v7 = vadd.f32 %v1509_v6, %v1397_v3 }
 0x15a   : > { %v1398_v8 = vpop.f32.mrb[48].mxu0 }
 0x15b   : > { %1136 = vst [vmem:[%s1875_s30 + $0xb8] sm:$0xff] %v1078_v7  ;;  %v1510_v9 = vpop.f32.mrb[48].mxu1  ;;  %v1399_v10 = vpop.f32.mrb[49].mxu0 }
 0x15c   : > { %v1400_v11 = vadd.f32 %v1399_v10, %v1398_v8  ;;  %v1511_v12 = vpop.f32.mrb[49].mxu1  ;;  %v1401_v13 = vpop.f32.mrb[50].mxu0 }
 0x15d   : > { %v1512_v14 = vadd.f32 %v1511_v12, %v1510_v9  ;;  %v1513_v15 = vpop.f32.mrb[50].mxu1  ;;  %v1402_v16 = vpop.f32.mrb[51].mxu0 }
 0x15e   : > { %v1403_v17 = vadd.f32 %v1402_v16, %v1401_v13  ;;  %v1514_v18 = vpop.f32.mrb[51].mxu1 }
 0x15f   : > { %v1083_v19 = vadd.f32 %v1512_v14, %v1400_v11  ;;  %v1515_v20 = vadd.f32 %v1514_v18, %v1513_v15 }
 0x161   : > { %1137 = vst [vmem:[%s1875_s30 + $0xc0] sm:$0xff] %v1083_v19  ;;  %v1086_v21 = vadd.f32 %v1515_v20, %v1403_v17 }
 0x162   : > { %v1404_v22 = vpop.f32.mrb[52].mxu0 }
 0x163   : > { %1138 = vst [vmem:[%s1875_s30 + $0xc8] sm:$0xff] %v1086_v21  ;;  %v1516_v23 = vpop.f32.mrb[52].mxu1  ;;  %v1405_v24 = vpop.f32.mrb[53].mxu0 }
 0x164   : > { %v1406_v25 = vadd.f32 %v1405_v24, %v1404_v22  ;;  %v1517_v26 = vpop.f32.mrb[53].mxu1  ;;  %v1407_v27 = vpop.f32.mrb[54].mxu0 }
 0x165   : > { %v1518_v28 = vadd.f32 %v1517_v26, %v1516_v23  ;;  %v1519_v29 = vpop.f32.mrb[54].mxu1  ;;  %v1408_v30 = vpop.f32.mrb[55].mxu0 }
 0x166   : > { %v1409_v31 = vadd.f32 %v1408_v30, %v1407_v27  ;;  %v1520_v32 = vpop.f32.mrb[55].mxu1 }
 0x167   : > { %v1091_v33 = vadd.f32 %v1518_v28, %v1406_v25  ;;  %v1521_v34 = vadd.f32 %v1520_v32, %v1519_v29 }
 0x169   : > { %1139 = vst [vmem:[%s1875_s30 + $0xd0] sm:$0xff] %v1091_v33  ;;  %v1094_v35 = vadd.f32 %v1521_v34, %v1409_v31 }
 0x16a   : > { %v1410_v36 = vpop.f32.mrb[56].mxu0 }
 0x16b   : > { %1140 = vst [vmem:[%s1875_s30 + $0xd8] sm:$0xff] %v1094_v35  ;;  %v1522_v37 = vpop.f32.mrb[56].mxu1  ;;  %v1411_v38 = vpop.f32.mrb[57].mxu0 }
 0x16c   : > { %v1412_v39 = vadd.f32 %v1411_v38, %v1410_v36  ;;  %v1523_v40 = vpop.f32.mrb[57].mxu1  ;;  %v1413_v41 = vpop.f32.mrb[58].mxu0 }
 0x16d   : > { %v1524_v42 = vadd.f32 %v1523_v40, %v1522_v37  ;;  %v1525_v43 = vpop.f32.mrb[58].mxu1  ;;  %v1414_v44 = vpop.f32.mrb[59].mxu0 }
 0x16e   : > { %v1415_v45 = vadd.f32 %v1414_v44, %v1413_v41  ;;  %v1526_v46 = vpop.f32.mrb[59].mxu1 }
 0x16f   : > { %v1099_v47 = vadd.f32 %v1524_v42, %v1412_v39  ;;  %v1527_v48 = vadd.f32 %v1526_v46, %v1525_v43 }
 0x171   : > { %1141 = vst [vmem:[%s1875_s30 + $0xe0] sm:$0xff] %v1099_v47  ;;  %v1102_v49 = vadd.f32 %v1527_v48, %v1415_v45 }
 0x172   : > { %v1416_v50 = vpop.f32.mrb[60].mxu0 }
 0x173   : > { %1142 = vst [vmem:[%s1875_s30 + $0xe8] sm:$0xff] %v1102_v49  ;;  %v1528_v51 = vpop.f32.mrb[60].mxu1  ;;  %v1417_v52 = vpop.f32.mrb[61].mxu0 }
 0x174   : > { %v1418_v53 = vadd.f32 %v1417_v52, %v1416_v50  ;;  %v1529_v54 = vpop.f32.mrb[61].mxu1  ;;  %v1419_v55 = vpop.f32.mrb[62].mxu0 }
 0x175   : > { %v1530_v56 = vadd.f32 %v1529_v54, %v1528_v51  ;;  %v1531_v57 = vpop.f32.mrb[62].mxu1  ;;  %v1420_v58 = vpop.f32.mrb[63].mxu0 }
 0x176   : > { %v1421_v59 = vadd.f32 %v1420_v58, %v1419_v55  ;;  %v1532_v60 = vpop.f32.mrb[63].mxu1 }
 0x177   : > { %v1107_v61 = vadd.f32 %v1530_v56, %v1418_v53  ;;  %v1533_v62 = vadd.f32 %v1532_v60, %v1531_v57 }
 0x179   : > { %1143 = vst [vmem:[%s1875_s30 + $0xf0] sm:$0xff] %v1107_v61  ;;  %v1110_v63 = vadd.f32 %v1533_v62, %v1421_v59 }
 0x17b   : > { %1144 = vst [vmem:[%s1875_s30 + $0xf8] sm:$0xff] %v1110_v63 }
 0x17c PF: > { %s12_s9 = sadd.s32 1, %s1676_s9  }
 0x17d   : > { %p9_p4 = scmp.ge.s32.totalorder %s12_s9, 4  }
 0x17f   :  { %11 = sbr.rel (!%p9_p4) target bundleno = 1 (0x1), region = 58 }

// kernel: _lambda_.5
= control target key start
LH: loop header
LB: loop body
LE: loop exit
PB: predicated region body
PF: predicated region fallthrough
CT: control target
= control target key end

     0   :  { %s1476_s9 = smov 0   ;;  %s1677_s0 = inlined_call_operand.vmem [shape: bf16[512,384], index: 0, kind: input, shape index: {}]   ;;  %s1678_s1 = inlined_call_operand.vmem [shape: bf16[384,128], index: 1, kind: input, shape index: {}]   ;;  %s1679_s2 = inlined_call_operand.vmem [shape: f32[512,128], index: 2, kind: output, shape index: {}]  }
   0x1 LB: > { %s1073_s10 = sadd.s32 4294967295, %s1459_s9   ;;  %p1077_p0 = scmp.ge.s32.totalorder %s1459_s9, 1  ;;  %s1459_s9 = sphi %s1476_s9, %s12_s9  }
   0x2   : > { %p114_p1 = scmp.lt.s32.totalorder %s1459_s9, 3 }
   0x4   : > { %p115_p2 = pnand %p1077_p0, %p114_p1 }
   0x5   : > { %v1365_v0 = vld [vmem:[%s1678_s1 + $0x40] sm:$0xff] (!%p115_p2)   ;;  %s1078_s13 = sshll.u32 (!%p115_p2), %s1073_s10, 5  ;;  %v1367_v2 = vld [vmem:[%s1678_s1 + $0x48] sm:$0xff] (!%p115_p2)   ;;  %v1369_v4 = vld [vmem:[%s1678_s1 + $0x50] sm:$0xff] (!%p115_p2)  }
   0x6   : > { %118 = sbr.rel (%p115_p2) target bundleno = 346 (0x15a), region = 28  ;;  %v1366_v1 = vld [vmem:[%s1678_s1] sm:$0xff] (!%p115_p2)   ;;  %1156 = vmatprep.subr.bf16.mxu0 (!%p115_p2), %v1365_v0  ;;  %1340 = vmatprep.subr.bf16.mxu1 (!%p115_p2), %v1365_v0  ;;  %p138_p3 = scmp.lt.s32.totalorder (!%p115_p2), %s1078_s13, 63  ;;  %v1368_v3 = vld [vmem:[%s1678_s1 + $0x8] sm:$0xff] (!%p115_p2)   ;;  %v1370_v5 = vld [vmem:[%s1678_s1 + $0x10] sm:$0xff] (!%p115_p2)  }
   0x7   : > { %1157 = vmatpush3.bf16.msra.mxu0 (!%p115_p2), %v1366_v1  ;;  %1348 = vmatpush3.bf16.msra.mxu1 (!%p115_p2), %v1366_v1  ;;  %v1371_v6 = vld [vmem:[%s1678_s1 + $0x58] sm:$0xff] (!%p115_p2)   ;;  %v1373_v8 = vld [vmem:[%s1678_s1 + $0x60] sm:$0xff] (!%p115_p2)   ;;  %v1375_v10 = vld [vmem:[%s1678_s1 + $0x68] sm:$0xff] (!%p115_p2)  }
   0x8   : > { %1158 = vmatprep.subr.bf16.mxu0 (!%p115_p2), %v1367_v2  ;;  %1341 = vmatprep.subr.bf16.mxu1 (!%p115_p2), %v1367_v2  ;;  %v1372_v7 = vld [vmem:[%s1678_s1 + $0x18] sm:$0xff] (!%p115_p2)   ;;  %v1374_v9 = vld [vmem:[%s1678_s1 + $0x20] sm:$0xff] (!%p115_p2)   ;;  %v1376_v13 = vld [vmem:[%s1678_s1 + $0x28] sm:$0xff] (!%p115_p2)  }
   0x9   : > { %v1377_v14 = vld [vmem:[%s1678_s1 + $0x70] sm:$0xff] (!%p115_p2)   ;;  %v1379_v16 = vld [vmem:[%s1678_s1 + $0x78] sm:$0xff] (!%p115_p2)   ;;  %v1387_v18 = vld [vmem:[%s1678_s1 + $0x80] sm:$0xff] (!%p115_p2)  }
   0xa   : > { %v1378_v15 = vld [vmem:[%s1678_s1 + $0x30] sm:$0xff] (!%p115_p2)   ;;  %v1380_v17 = vld [vmem:[%s1678_s1 + $0x38] sm:$0xff] (!%p115_p2)   ;;  %v1388_v22 = vld [vmem:[%s1678_s1 + $0x88] sm:$0xff] (!%p115_p2)  }
   0xb   : > { %1159 = vmatpush3.bf16.msra.mxu0 (!%p115_p2), %v1368_v3  ;;  %1349 = vmatpush3.bf16.msra.mxu1 (!%p115_p2), %v1368_v3  ;;  %v1395_v25 = vld [vmem:[%s1678_s1 + $0x90] sm:$0xff] (!%p115_p2)   ;;  %v1396_v27 = vld [vmem:[%s1678_s1 + $0x98] sm:$0xff] (!%p115_p2)   ;;  %v1403_v30 = vld [vmem:[%s1678_s1 + $0xa0] sm:$0xff] (!%p115_p2)  }
   0xc   : > { %1160 = vmatprep.subr.bf16.mxu0 (!%p115_p2), %v1369_v4  ;;  %1342 = vmatprep.subr.bf16.mxu1 (!%p115_p2), %v1369_v4  ;;  %v1404_v33 = vld [vmem:[%s1678_s1 + $0xa8] sm:$0xff] (!%p115_p2)   ;;  %v1411_v36 = vld [vmem:[%s1678_s1 + $0xb0] sm:$0xff] (!%p115_p2)   ;;  %v1412_v40 = vld [vmem:[%s1678_s1 + $0xb8] sm:$0xff] (!%p115_p2)  }
   0xd   : > { %s1681_s13 = smov (!%p138_p3, %s1078_s13), 63 }
   0xe   : > { %s1356_s26 = smul.u32 12, %s1681_s13 }
   0xf   : > { %1161 = vmatpush3.bf16.msra.mxu0 %v1370_v5  ;;  %1350 = vmatpush3.bf16.msra.mxu1 %v1370_v5 }
  0x10   : > { %1162 = vmatprep.subr.bf16.mxu0 %v1371_v6  ;;  %1343 = vmatprep.subr.bf16.mxu1 %v1371_v6  ;;  %s1517_s5 = scalar_lea.vmem %s1677_s0, %s1356_s26 }
  0x11   : > { %v1383_v11 = vld [vmem:[%s1517_s5 + $0x4] ss:$12 sps:$4 sm:$0xff]   ;;  %v1381_v19 = vld [vmem:[%s1517_s5] ss:$12 sps:$4 sm:$0xff]   ;;  %v1389_v21 = vld [vmem:[%s1517_s5 + $0x1c] ss:$12 sps:$4 sm:$0xff]  }
  0x12   : > { %v1386_v12 = vld [vmem:[%s1517_s5 + $0x124] ss:$12 sps:$4 sm:$0xff]   ;;  %695 = vmatprep.mubr.bf16.mxu0 %v1383_v11  ;;  %v1384_v20 = vld [vmem:[%s1517_s5 + $0x120] ss:$12 sps:$4 sm:$0xff]   ;;  %v1391_v23 = vld [vmem:[%s1517_s5 + $0x13c] ss:$12 sps:$4 sm:$0xff]  }
  0x13   : > { %1163 = vmatpush3.bf16.msra.mxu0 %v1372_v7  ;;  %1351 = vmatpush3.bf16.msra.mxu1 %v1372_v7  ;;  %v1393_v24 = vld [vmem:[%s1517_s5 + $0x18] ss:$12 sps:$4 sm:$0xff]   ;;  %v1397_v28 = vld [vmem:[%s1517_s5 + $0x34] ss:$12 sps:$4 sm:$0xff]   ;;  %v1401_v31 = vld [vmem:[%s1517_s5 + $0x30] ss:$12 sps:$4 sm:$0xff]  }
  0x14   : > { %1164 = vmatprep.subr.bf16.mxu0 %v1373_v8  ;;  %1344 = vmatprep.subr.bf16.mxu1 %v1373_v8  ;;  %v1394_v26 = vld [vmem:[%s1517_s5 + $0x138] ss:$12 sps:$4 sm:$0xff]   ;;  %v1399_v29 = vld [vmem:[%s1517_s5 + $0x154] ss:$12 sps:$4 sm:$0xff]   ;;  %v1402_v32 = vld [vmem:[%s1517_s5 + $0x150] ss:$12 sps:$4 sm:$0xff]  }
  0x15   : > { %791 = vmatprep.mubr.bf16.mxu1 %v1386_v12  ;;  %v1405_v34 = vld [vmem:[%s1517_s5 + $0x4c] ss:$12 sps:$4 sm:$0xff]   ;;  %v1409_v37 = vld [vmem:[%s1517_s5 + $0x48] ss:$12 sps:$4 sm:$0xff]   ;;  %v1413_v39 = vld [vmem:[%s1517_s5 + $0x64] ss:$12 sps:$4 sm:$0xff]  }
  0x16   : > { %v1407_v35 = vld [vmem:[%s1517_s5 + $0x16c] ss:$12 sps:$4 sm:$0xff]   ;;  %v1410_v38 = vld [vmem:[%s1517_s5 + $0x168] ss:$12 sps:$4 sm:$0xff]   ;;  %v1422_v47 = vld [vmem:[%s1517_s5 + $0x50] ss:$12 sps:$4 sm:$0xff]  }
  0x17   : > { %1165 = vmatpush3.bf16.msra.mxu0 %v1374_v9  ;;  %1352 = vmatpush3.bf16.msra.mxu1 %v1374_v9  ;;  %v1415_v41 = vld [vmem:[%s1517_s5 + $0x8] ss:$12 sps:$4 sm:$0xff]   ;;  %v1416_v42 = vld [vmem:[%s1517_s5 + $0x60] ss:$12 sps:$4 sm:$0xff]   ;;  %v1420_v45 = vld [vmem:[%s1517_s5 + $0x38] ss:$12 sps:$4 sm:$0xff]  }
  0x18   : > { %1166 = vmatprep.subr.bf16.mxu0 %v1375_v10  ;;  %1345 = vmatprep.subr.bf16.mxu1 %v1375_v10  ;;  %v1417_v43 = vld [vmem:[%s1517_s5 + $0x20] ss:$12 sps:$4 sm:$0xff]   ;;  %v1418_v44 = vld [vmem:[%s1517_s5 + $0x7c] ss:$12 sps:$4 sm:$0xff]   ;;  %v1421_v46 = vld [vmem:[%s1517_s5 + $0x78] ss:$12 sps:$4 sm:$0xff]  }
  0x19   : > { %v1423_v48 = vld [vmem:[%s1517_s5 + $0x94] ss:$12 sps:$4 sm:$0xff]   ;;  %v1426_v50 = vld [vmem:[%s1517_s5 + $0x90] ss:$12 sps:$4 sm:$0xff]   ;;  %v1428_v52 = vld [vmem:[%s1517_s5 + $0xac] ss:$12 sps:$4 sm:$0xff]  }
  0x1a   : > { %v1425_v49 = vld [vmem:[%s1517_s5 + $0x68] ss:$12 sps:$4 sm:$0xff]   ;;  %v1427_v51 = vld [vmem:[%s1517_s5 + $0x80] ss:$12 sps:$4 sm:$0xff]   ;;  %v1430_v53 = vld [vmem:[%s1517_s5 + $0x98] ss:$12 sps:$4 sm:$0xff]  }
  0x1b   : > { %1167 = vmatpush3.bf16.msra.mxu0 %v1376_v13  ;;  %1353 = vmatpush3.bf16.msra.mxu1 %v1376_v13  ;;  %v1431_v54 = vld [vmem:[%s1517_s5 + $0xa8] ss:$12 sps:$4 sm:$0xff]   ;;  %v1432_v55 = vld [vmem:[%s1517_s5 + $0xb0] ss:$12 sps:$4 sm:$0xff]   ;;  %v1436_v58 = vld [vmem:[%s1517_s5 + $0xc0] ss:$12 sps:$4 sm:$0xff]  }
  0x1c   : > { %1168 = vmatprep.subr.bf16.mxu0 %v1377_v14  ;;  %1346 = vmatprep.subr.bf16.mxu1 %v1377_v14  ;;  %v1433_v56 = vld [vmem:[%s1517_s5 + $0xc4] ss:$12 sps:$4 sm:$0xff]   ;;  %v1435_v57 = vld [vmem:[%s1517_s5 + $0xc8] ss:$12 sps:$4 sm:$0xff]   ;;  %v1437_v59 = vld [vmem:[%s1517_s5 + $0xe0] ss:$12 sps:$4 sm:$0xff]  }
  0x1d   : > { %v1438_v60 = vld [vmem:[%s1517_s5 + $0xdc] ss:$12 sps:$4 sm:$0xff]   ;;  %v1440_v61 = vld [vmem:[%s1517_s5 + $0xf8] ss:$12 sps:$4 sm:$0xff]   ;;  %v1443_v0 = vld [vmem:[%s1517_s5 + $0xf4] ss:$12 sps:$4 sm:$0xff]  }
  0x1e   : > { %v1441_v62 = vld [vmem:[%s1517_s5 + $0xd8] ss:$12 sps:$4 sm:$0xff]   ;;  %v1442_v63 = vld [vmem:[%s1517_s5 + $0x110] ss:$12 sps:$4 sm:$0xff]   ;;  %v1445_v1 = vld [vmem:[%s1517_s5 + $0x128] ss:$12 sps:$4 sm:$0xff]  }
  0x1f   : > { %1169 = vmatpush3.bf16.msra.mxu0 %v1378_v15  ;;  %1354 = vmatpush3.bf16.msra.mxu1 %v1378_v15  ;;  %v1446_v2 = vld [vmem:[%s1517_s5 + $0xf0] ss:$12 sps:$4 sm:$0xff]   ;;  %v1447_v3 = vld [vmem:[%s1517_s5 + $0x140] ss:$12 sps:$4 sm:$0xff]   ;;  %v1450_v5 = vld [vmem:[%s1517_s5 + $0x158] ss:$12 sps:$4 sm:$0xff]  }
  0x20   : > { %1170 = vmatprep.subr.bf16.mxu0 %v1379_v16  ;;  %1347 = vmatprep.subr.bf16.mxu1 %v1379_v16  ;;  %v1448_v4 = vld [vmem:[%s1517_s5 + $0x10c] ss:$12 sps:$4 sm:$0xff]   ;;  %v1451_v6 = vld [vmem:[%s1517_s5 + $0x108] ss:$12 sps:$4 sm:$0xff]   ;;  %v1452_v7 = vld [vmem:[%s1517_s5 + $0x170] ss:$12 sps:$4 sm:$0xff]  }
  0x21   : > { %s1081_s5 = sshll.u32 %s1681_s13, 3 }
  0x22   : > { %s1632_s15 = scalar_lea.vmem %s1679_s2, %s1081_s5 }
  0x23   : > { %1171 = vmatpush3.bf16.msra.mxu0 %v1380_v17  ;;  %1355 = vmatpush3.bf16.msra.mxu1 %v1380_v17 }
  0x24   : > { %1292 = vmatprep.subr.bf16.mxu1 %v1387_v18 }
  0x26   : > { %696 = vmatmul.mubr.bf16.vlgmr.msra.gmra.mrb[0].mxu0 %v1381_v19  ;;  %792 = vmatmul.mubr.bf16.vlgmr.msra.gmra.mrb[0].mxu1 %v1384_v20 }
  0x27   : > { %1293 = vmatpush3.bf16.msra.mxu1 %v1387_v18  ;;  %703 = vmatprep.mubr.bf16.mxu0 %v1389_v21 }
  0x28   : > { %1294 = vmatprep.subr.bf16.mxu1 %v1388_v22  ;;  %799 = vmatprep.mubr.bf16.mxu1 %v1391_v23 }
  0x2b   : > { %1295 = vmatpush3.bf16.msra.mxu1 %v1388_v22 }
  0x2c   : > { %1296 = vmatprep.subr.bf16.mxu1 %v1395_v25 }
  0x2e   : > { %704 = vmatmul.mubr.bf16.gmra.mrb[4].mxu0 %v1393_v24  ;;  %800 = vmatmul.mubr.bf16.gmra.mrb[4].mxu1 %v1394_v26 }
  0x2f   : > { %1297 = vmatpush3.bf16.msra.mxu1 %v1395_v25  ;;  %711 = vmatprep.mubr.bf16.mxu0 %v1397_v28 }
  0x30   : > { %1298 = vmatprep.subr.bf16.mxu1 %v1396_v27  ;;  %807 = vmatprep.mubr.bf16.mxu1 %v1399_v29 }
  0x33   : > { %1299 = vmatpush3.bf16.msra.mxu1 %v1396_v27 }
  0x34   : > { %1300 = vmatprep.subr.bf16.mxu1 %v1403_v30 }
  0x36   : > { %712 = vmatmul.mubr.bf16.gmra.mrb[8].mxu0 %v1401_v31  ;;  %808 = vmatmul.mubr.bf16.gmra.mrb[8].mxu1 %v1402_v32 }
  0x37   : > { %1301 = vmatpush3.bf16.msra.mxu1 %v1403_v30  ;;  %719 = vmatprep.mubr.bf16.mxu0 %v1405_v34 }
  0x38   : > { %1302 = vmatprep.subr.bf16.mxu1 %v1404_v33  ;;  %815 = vmatprep.mubr.bf16.mxu1 %v1407_v35 }
  0x3b   : > { %1303 = vmatpush3.bf16.msra.mxu1 %v1404_v33 }
  0x3c   : > { %1304 = vmatprep.subr.bf16.mxu1 %v1411_v36 }
  0x3e   : > { %720 = vmatmul.mubr.bf16.gmra.mrb[12].mxu0 %v1409_v37  ;;  %816 = vmatmul.mubr.bf16.gmra.mrb[12].mxu1 %v1410_v38 }
  0x3f   : > { %1305 = vmatpush3.bf16.msra.mxu1 %v1411_v36  ;;  %727 = vmatprep.mubr.bf16.mxu0 %v1413_v39 }
  0x40   : > { %1306 = vmatprep.subr.bf16.mxu1 %v1412_v40  ;;  %1308 = vmatprep.mubr.bf16.mxu1 %v1415_v41 }
  0x43   : > { %1307 = vmatpush3.bf16.msra.mxu1 %v1412_v40 }
  0x46   : > { %728 = vmatmul.mubr.bf16.gmra.mrb[16].mxu0 %v1416_v42  ;;  %1309 = vmatmul.mubr.bf16.vlgmr.msra.gmra.mrb[16].mxu1 %v1417_v43 }
  0x47   : > { %735 = vmatprep.mubr.bf16.mxu0 %v1418_v44  ;;  %1312 = vmatprep.mubr.bf16.mxu1 %v1420_v45 }
  0x4e   : > { %736 = vmatmul.mubr.bf16.gmra.mrb[20].mxu0 %v1421_v46  ;;  %1313 = vmatmul.mubr.bf16.gmra.mrb[20].mxu1 %v1422_v47 }
  0x4f   : > { %743 = vmatprep.mubr.bf16.mxu0 %v1423_v48  ;;  %1316 = vmatprep.mubr.bf16.mxu1 %v1425_v49 }
  0x56   : > { %744 = vmatmul.mubr.bf16.gmra.mrb[24].mxu0 %v1426_v50  ;;  %1317 = vmatmul.mubr.bf16.gmra.mrb[24].mxu1 %v1427_v51 }
  0x57   : > { %751 = vmatprep.mubr.bf16.mxu0 %v1428_v52  ;;  %1320 = vmatprep.mubr.bf16.mxu1 %v1430_v53 }
  0x5e   : > { %752 = vmatmul.mubr.bf16.gmra.mrb[28].mxu0 %v1431_v54  ;;  %1321 = vmatmul.mubr.bf16.gmra.mrb[28].mxu1 %v1432_v55 }
  0x5f   : > { %759 = vmatprep.mubr.bf16.mxu0 %v1433_v56  ;;  %1324 = vmatprep.mubr.bf16.mxu1 %v1435_v57 }
  0x66   : > { %760 = vmatmul.mubr.bf16.gmra.mrb[32].mxu0 %v1436_v58  ;;  %1325 = vmatmul.mubr.bf16.gmra.mrb[32].mxu1 %v1437_v59 }
  0x67   : > { %767 = vmatprep.mubr.bf16.mxu0 %v1438_v60  ;;  %1328 = vmatprep.mubr.bf16.mxu1 %v1440_v61 }
  0x6e   : > { %768 = vmatmul.mubr.bf16.gmra.mrb[36].mxu0 %v1441_v62  ;;  %1329 = vmatmul.mubr.bf16.gmra.mrb[36].mxu1 %v1442_v63 }
  0x6f   : > { %775 = vmatprep.mubr.bf16.mxu0 %v1443_v0  ;;  %1332 = vmatprep.mubr.bf16.mxu1 %v1445_v1 }
  0x76   : > { %776 = vmatmul.mubr.bf16.gmra.mrb[40].mxu0 %v1446_v2  ;;  %1333 = vmatmul.mubr.bf16.gmra.mrb[40].mxu1 %v1447_v3 }
  0x77   : > { %783 = vmatprep.mubr.bf16.mxu0 %v1448_v4  ;;  %1336 = vmatprep.mubr.bf16.mxu1 %v1450_v5 }
  0x7e   : > { %784 = vmatmul.mubr.bf16.gmra.mrb[44].mxu0 %v1451_v6  ;;  %1337 = vmatmul.mubr.bf16.gmra.mrb[44].mxu1 %v1452_v7 }
  0xf9   : > { %v1172_v8 = vpop.f32.mrb[0].mxu0  ;;  %v1244_v9 = vpop.f32.mrb[0].mxu1 }
  0xfa   : > { %v1173_v10 = vpop.f32.mrb[1].mxu0  ;;  %v1245_v11 = vpop.f32.mrb[1].mxu1 }
  0xfb   : > { %v1174_v12 = vadd.f32 %v1173_v10, %v1172_v8  ;;  %v1612_v13 = vadd.f32 %v1245_v11, %v1244_v9  ;;  %v1175_v14 = vpop.f32.mrb[2].mxu0  ;;  %v1247_v15 = vpop.f32.mrb[2].mxu1 }
  0xfc   : > { %v1176_v16 = vpop.f32.mrb[3].mxu0  ;;  %v1248_v17 = vpop.f32.mrb[3].mxu1 }
  0xfd   : > { %v1177_v18 = vadd.f32 %v1176_v16, %v1175_v14  ;;  %v1614_v19 = vadd.f32 %v1248_v17, %v1247_v15 }
 0x101   : > { %v1178_v20 = vpop.f32.mrb[4].mxu0  ;;  %v1250_v21 = vpop.f32.mrb[4].mxu1 }
 0x102   : > { %v1179_v22 = vpop.f32.mrb[5].mxu0  ;;  %v1251_v23 = vpop.f32.mrb[5].mxu1 }
 0x103   : > { %v1180_v24 = vadd.f32 %v1179_v22, %v1178_v20  ;;  %v1616_v25 = vadd.f32 %v1251_v23, %v1250_v21  ;;  %v1181_v26 = vpop.f32.mrb[6].mxu0  ;;  %v1253_v27 = vpop.f32.mrb[6].mxu1 }
 0x104   : > { %v1182_v28 = vpop.f32.mrb[7].mxu0  ;;  %v1254_v29 = vpop.f32.mrb[7].mxu1 }
 0x105   : > { %v1183_v30 = vadd.f32 %v1182_v28, %v1181_v26  ;;  %v1618_v31 = vadd.f32 %v1254_v29, %v1253_v27 }
 0x109   : > { %v1184_v32 = vpop.f32.mrb[8].mxu0  ;;  %v1256_v33 = vpop.f32.mrb[8].mxu1 }
 0x10a   : > { %v1185_v34 = vpop.f32.mrb[9].mxu0  ;;  %v1257_v35 = vpop.f32.mrb[9].mxu1 }
 0x10b   : > { %v1186_v36 = vadd.f32 %v1185_v34, %v1184_v32  ;;  %v1620_v37 = vadd.f32 %v1257_v35, %v1256_v33  ;;  %v1187_v38 = vpop.f32.mrb[10].mxu0  ;;  %v1259_v39 = vpop.f32.mrb[10].mxu1 }
 0x10c   : > { %v1188_v40 = vpop.f32.mrb[11].mxu0  ;;  %v1260_v41 = vpop.f32.mrb[11].mxu1 }
 0x10d   : > { %v1189_v42 = vadd.f32 %v1188_v40, %v1187_v38  ;;  %v1622_v43 = vadd.f32 %v1260_v41, %v1259_v39 }
 0x111   : > { %v1190_v44 = vpop.f32.mrb[12].mxu0  ;;  %v1262_v45 = vpop.f32.mrb[12].mxu1 }
 0x112   : > { %v1191_v46 = vpop.f32.mrb[13].mxu0  ;;  %v1263_v47 = vpop.f32.mrb[13].mxu1 }
 0x113   : > { %v1192_v48 = vadd.f32 %v1191_v46, %v1190_v44  ;;  %v1624_v49 = vadd.f32 %v1263_v47, %v1262_v45  ;;  %v1193_v50 = vpop.f32.mrb[14].mxu0  ;;  %v1265_v51 = vpop.f32.mrb[14].mxu1 }
 0x114   : > { %v1194_v52 = vpop.f32.mrb[15].mxu0  ;;  %v1266_v53 = vpop.f32.mrb[15].mxu1 }
 0x115   : > { %v1195_v54 = vadd.f32 %v1194_v52, %v1193_v50  ;;  %v1626_v55 = vadd.f32 %v1266_v53, %v1265_v51 }
 0x119   : > { %v1196_v56 = vpop.f32.mrb[16].mxu0  ;;  %v1310_v57 = vpop.f32.mrb[16].mxu1 }
 0x11a   : > { %v867_v58 = vadd.f32 %v1310_v57, %v1180_v24  ;;  %v1197_v59 = vpop.f32.mrb[17].mxu0  ;;  %v858_v60 = vpop.f32.mrb[17].mxu1 }
 0x11b   : > { %v1198_v61 = vadd.f32 %v1197_v59, %v1196_v56  ;;  %v859_v62 = vadd.f32 %v1174_v12, %v858_v60  ;;  %v1199_v63 = vpop.f32.mrb[18].mxu0  ;;  %v1311_v0 = vpop.f32.mrb[18].mxu1 }
 0x11c   : > { %987 = vst [vmem:[%s1632_s15 + $0x10] sm:$0xff] %v867_v58  ;;  %v870_v1 = vadd.f32 %v1311_v0, %v1183_v30  ;;  %v1200_v2 = vpop.f32.mrb[19].mxu0  ;;  %v861_v3 = vpop.f32.mrb[19].mxu1 }
 0x11d   : > { %985 = vst [vmem:[%s1632_s15] sm:$0xff] %v859_v62  ;;  %v1201_v4 = vadd.f32 %v1200_v2, %v1199_v63  ;;  %v862_v5 = vadd.f32 %v1177_v18, %v861_v3 }
 0x11e   : > { %988 = vst [vmem:[%s1632_s15 + $0x18] sm:$0xff] %v870_v1 }
 0x11f   : > { %986 = vst [vmem:[%s1632_s15 + $0x8] sm:$0xff] %v862_v5 }
 0x121   : > { %v1202_v6 = vpop.f32.mrb[20].mxu0  ;;  %v1314_v7 = vpop.f32.mrb[20].mxu1 }
 0x122   : > { %v883_v8 = vadd.f32 %v1314_v7, %v1192_v48  ;;  %v1203_v9 = vpop.f32.mrb[21].mxu0  ;;  %v874_v10 = vpop.f32.mrb[21].mxu1 }
 0x123   : > { %v1204_v11 = vadd.f32 %v1203_v9, %v1202_v6  ;;  %v875_v12 = vadd.f32 %v1186_v36, %v874_v10  ;;  %v1205_v14 = vpop.f32.mrb[22].mxu0  ;;  %v1315_v15 = vpop.f32.mrb[22].mxu1 }
 0x124   : > { %991 = vst [vmem:[%s1632_s15 + $0x30] sm:$0xff] %v883_v8  ;;  %v886_v16 = vadd.f32 %v1315_v15, %v1195_v54  ;;  %v1206_v17 = vpop.f32.mrb[23].mxu0  ;;  %v877_v20 = vpop.f32.mrb[23].mxu1 }
 0x125   : > { %989 = vst [vmem:[%s1632_s15 + $0x20] sm:$0xff] %v875_v12  ;;  %v1207_v18 = vadd.f32 %v1206_v17, %v1205_v14  ;;  %v878_v21 = vadd.f32 %v1189_v42, %v877_v20 }
 0x126   : > { %992 = vst [vmem:[%s1632_s15 + $0x38] sm:$0xff] %v886_v16 }
 0x127   : > { %990 = vst [vmem:[%s1632_s15 + $0x28] sm:$0xff] %v878_v21 }
 0x129   : > { %v1208_v22 = vpop.f32.mrb[24].mxu0  ;;  %v1318_v23 = vpop.f32.mrb[24].mxu1 }
 0x12a   : > { %v899_v24 = vadd.f32 %v1318_v23, %v1204_v11  ;;  %v1209_v26 = vpop.f32.mrb[25].mxu0  ;;  %v890_v27 = vpop.f32.mrb[25].mxu1 }
 0x12b   : > { %v1210_v28 = vadd.f32 %v1209_v26, %v1208_v22  ;;  %v891_v29 = vadd.f32 %v1198_v61, %v890_v27  ;;  %v1211_v30 = vpop.f32.mrb[26].mxu0  ;;  %v1319_v32 = vpop.f32.mrb[26].mxu1 }
 0x12c   : > { %995 = vst [vmem:[%s1632_s15 + $0x50] sm:$0xff] %v899_v24  ;;  %v902_v33 = vadd.f32 %v1319_v32, %v1207_v18  ;;  %v1212_v34 = vpop.f32.mrb[27].mxu0  ;;  %v893_v35 = vpop.f32.mrb[27].mxu1 }
 0x12d   : > { %993 = vst [vmem:[%s1632_s15 + $0x40] sm:$0xff] %v891_v29  ;;  %v1213_v36 = vadd.f32 %v1212_v34, %v1211_v30  ;;  %v894_v38 = vadd.f32 %v1201_v4, %v893_v35 }
 0x12e   : > { %996 = vst [vmem:[%s1632_s15 + $0x58] sm:$0xff] %v902_v33 }
 0x12f   : > { %994 = vst [vmem:[%s1632_s15 + $0x48] sm:$0xff] %v894_v38 }
 0x131   : > { %v1214_v39 = vpop.f32.mrb[28].mxu0  ;;  %v1322_v40 = vpop.f32.mrb[28].mxu1 }
 0x132   : > { %v1215_v41 = vpop.f32.mrb[29].mxu0  ;;  %v906_v42 = vpop.f32.mrb[29].mxu1 }
 0x133   : > { %v1216_v44 = vadd.f32 %v1215_v41, %v1214_v39  ;;  %v907_v45 = vadd.f32 %v1210_v28, %v906_v42  ;;  %v1217_v46 = vpop.f32.mrb[30].mxu0  ;;  %v1323_v47 = vpop.f32.mrb[30].mxu1 }
 0x134   : > { %v1218_v48 = vpop.f32.mrb[31].mxu0  ;;  %v909_v50 = vpop.f32.mrb[31].mxu1 }
 0x135   : > { %v915_v51 = vadd.f32 %v1322_v40, %v1216_v44  ;;  %997 = vst [vmem:[%s1632_s15 + $0x60] sm:$0xff] %v907_v45  ;;  %v1219_v52 = vadd.f32 %v1218_v48, %v1217_v46  ;;  %v910_v53 = vadd.f32 %v1213_v36, %v909_v50 }
 0x137   : > { %999 = vst [vmem:[%s1632_s15 + $0x70] sm:$0xff] %v915_v51  ;;  %v918_v54 = vadd.f32 %v1323_v47, %v1219_v52  ;;  %998 = vst [vmem:[%s1632_s15 + $0x68] sm:$0xff] %v910_v53 }
 0x139   : > { %1000 = vst [vmem:[%s1632_s15 + $0x78] sm:$0xff] %v918_v54  ;;  %v1220_v56 = vpop.f32.mrb[32].mxu0  ;;  %v1326_v57 = vpop.f32.mrb[32].mxu1 }
 0x13a   : > { %v1221_v58 = vpop.f32.mrb[33].mxu0  ;;  %v922_v59 = vpop.f32.mrb[33].mxu1 }
 0x13b   : > { %v1222_v60 = vadd.f32 %v1221_v58, %v1220_v56  ;;  %v1223_v61 = vpop.f32.mrb[34].mxu0  ;;  %v1327_v62 = vpop.f32.mrb[34].mxu1 }
 0x13c   : > { %v1224_v63 = vpop.f32.mrb[35].mxu0  ;;  %v925_v0 = vpop.f32.mrb[35].mxu1 }
 0x13d   : > { %v923_v1 = vadd.f32 %v1222_v60, %v922_v59  ;;  %v1225_v2 = vadd.f32 %v1224_v63, %v1223_v61 }
 0x13f   : > { %1001 = vst [vmem:[%s1632_s15 + $0x80] sm:$0xff] %v923_v1  ;;  %v926_v3 = vadd.f32 %v1225_v2, %v925_v0 }
 0x141   : > { %1002 = vst [vmem:[%s1632_s15 + $0x88] sm:$0xff] %v926_v3  ;;  %v1226_v4 = vpop.f32.mrb[36].mxu0  ;;  %v1330_v5 = vpop.f32.mrb[36].mxu1 }
 0x142   : > { %v1227_v6 = vpop.f32.mrb[37].mxu0  ;;  %v938_v7 = vpop.f32.mrb[37].mxu1 }
 0x143   : > { %v1228_v8 = vadd.f32 %v1227_v6, %v1226_v4  ;;  %v1229_v9 = vpop.f32.mrb[38].mxu0  ;;  %v1331_v10 = vpop.f32.mrb[38].mxu1 }
 0x144   : > { %v1230_v11 = vpop.f32.mrb[39].mxu0  ;;  %v941_v12 = vpop.f32.mrb[39].mxu1 }
 0x145   : > { %v931_v14 = vadd.f32 %v1326_v57, %v1228_v8  ;;  %v1231_v15 = vadd.f32 %v1230_v11, %v1229_v9 }
 0x147   : > { %1003 = vst [vmem:[%s1632_s15 + $0x90] sm:$0xff] %v931_v14  ;;  %v934_v16 = vadd.f32 %v1327_v62, %v1231_v15 }
 0x149   : > { %1004 = vst [vmem:[%s1632_s15 + $0x98] sm:$0xff] %v934_v16  ;;  %v1232_v17 = vpop.f32.mrb[40].mxu0  ;;  %v1334_v20 = vpop.f32.mrb[40].mxu1 }
 0x14a   : > { %v963_v18 = vadd.f32 %v1334_v20, %v1616_v25  ;;  %v1233_v21 = vpop.f32.mrb[41].mxu0  ;;  %v954_v22 = vpop.f32.mrb[41].mxu1 }
 0x14b   : > { %v1234_v23 = vadd.f32 %v1233_v21, %v1232_v17  ;;  %v955_v24 = vadd.f32 %v1612_v13, %v954_v22  ;;  %v1235_v26 = vpop.f32.mrb[42].mxu0  ;;  %v1335_v27 = vpop.f32.mrb[42].mxu1 }
 0x14c   : > { %1011 = vst [vmem:[%s1632_s15 + $0xd0] sm:$0xff] %v963_v18  ;;  %v966_v28 = vadd.f32 %v1335_v27, %v1618_v31  ;;  %v1236_v29 = vpop.f32.mrb[43].mxu0  ;;  %v957_v30 = vpop.f32.mrb[43].mxu1 }
 0x14d   : > { %v939_v32 = vadd.f32 %v1234_v23, %v938_v7  ;;  %1009 = vst [vmem:[%s1632_s15 + $0xc0] sm:$0xff] %v955_v24  ;;  %v1237_v33 = vadd.f32 %v1236_v29, %v1235_v26  ;;  %v958_v25 = vadd.f32 %v1614_v19, %v957_v30 }
 0x14e   : > { %1012 = vst [vmem:[%s1632_s15 + $0xd8] sm:$0xff] %v966_v28 }
 0x14f   : > { %1005 = vst [vmem:[%s1632_s15 + $0xa0] sm:$0xff] %v939_v32  ;;  %v942_v34 = vadd.f32 %v1237_v33, %v941_v12  ;;  %1010 = vst [vmem:[%s1632_s15 + $0xc8] sm:$0xff] %v958_v25 }
 0x151   : > { %1006 = vst [vmem:[%s1632_s15 + $0xa8] sm:$0xff] %v942_v34  ;;  %v1238_v13 = vpop.f32.mrb[44].mxu0  ;;  %v1338_v35 = vpop.f32.mrb[44].mxu1 }
 0x152   : > { %v979_v36 = vadd.f32 %v1338_v35, %v1624_v49  ;;  %v1239_v31 = vpop.f32.mrb[45].mxu0  ;;  %v970_v38 = vpop.f32.mrb[45].mxu1 }
 0x153   : > { %v1240_v39 = vadd.f32 %v1239_v31, %v1238_v13  ;;  %v971_v40 = vadd.f32 %v1620_v37, %v970_v38  ;;  %v1241_v19 = vpop.f32.mrb[46].mxu0  ;;  %v1339_v41 = vpop.f32.mrb[46].mxu1 }
 0x154   : > { %1015 = vst [vmem:[%s1632_s15 + $0xf0] sm:$0xff] %v979_v36  ;;  %v982_v42 = vadd.f32 %v1339_v41, %v1626_v55  ;;  %v1242_v44 = vpop.f32.mrb[47].mxu0  ;;  %v973_v45 = vpop.f32.mrb[47].mxu1 }
 0x155   : > { %v947_v46 = vadd.f32 %v1330_v5, %v1240_v39  ;;  %1013 = vst [vmem:[%s1632_s15 + $0xe0] sm:$0xff] %v971_v40  ;;  %v1243_v47 = vadd.f32 %v1242_v44, %v1241_v19  ;;  %v974_v49 = vadd.f32 %v1622_v43, %v973_v45 }
 0x156   : > { %1016 = vst [vmem:[%s1632_s15 + $0xf8] sm:$0xff] %v982_v42 }
 0x157   : > { %1007 = vst [vmem:[%s1632_s15 + $0xb0] sm:$0xff] %v947_v46  ;;  %v950_v48 = vadd.f32 %v1331_v10, %v1243_v47  ;;  %1014 = vst [vmem:[%s1632_s15 + $0xe8] sm:$0xff] %v974_v49 }
 0x159   : > { %1008 = vst [vmem:[%s1632_s15 + $0xb8] sm:$0xff] %v950_v48 }
 0x15a PF: > { %s12_s9 = sadd.s32 1, %s1459_s9  }
 0x15b   : > { %p9_p4 = scmp.ge.s32.totalorder %s12_s9, 4  }
 0x15d   :  { %11 = sbr.rel (!%p9_p4) target bundleno = 1 (0x1), region = 58 }

</bundles_post_ra>
